<compile_context>
chip_gen: v7x
topology: tpu7x:2x2x1
jax: 0.10.0
libtpu: 0.0.40
codegen_flags: <defaults>
</compile_context>

<pallas_src>
import jax
import jax.numpy as jnp
from jax.experimental import pallas as pl
from jax.experimental.pallas import tpu as pltpu

# ---- hyper-parameters (small, consistent with the RVAE config) ----
VOCAB  = 64   # params.vocab_size
EMBED  = 32   # params.word_embed_size
ENC_H  = 32   # params.encode_rnn_size
DEC_H  = 32   # params.decode_rnn_size
LATENT = 16   # params.latent_variable_size
BATCH  = 2
SEQ    = 8    # encoder seq_len; decoder sees SEQ + 2


# ---------------------------------------------------------------------------
# Fused kernel: embedding -> BiLSTM encoder -> mu/logvar -> reparam -> KLD
#               -> init_state -> LSTM decoder (z concat) -> vocab logits
# ---------------------------------------------------------------------------
def rvae_kernel(enc_ids_ref, dec_ids_ref, drop_ref, noise_ref, embed_ref,
                wif_ref, whf_ref, bf_ref,
                wib_ref, whb_ref, bb_ref,
                wmu_ref, bmu_ref, wlv_ref, blv_ref,
                wlat_ref, blat_ref,
                wix_ref, wiz_ref, whd_ref, bd_ref,
                wfc_ref, bfc_ref,
                logits_ref, hN_ref, cN_ref, kld_ref):
    S, B, S2 = SEQ, BATCH, SEQ + 2
    H, Hd, V = ENC_H, DEC_H, VOCAB
    f32 = jnp.float32

    # ---- embedding lookups as one-hot matmuls (gather on the MXU) ----
    embed = embed_ref[...]                                            # [V, E]
    enc_oh = jnp.where(
        enc_ids_ref[...] == jax.lax.broadcasted_iota(jnp.int32, (S * B, V), 1),
        1.0, 0.0)
    emb_enc = jnp.dot(enc_oh, embed, preferred_element_type=f32)      # [S*B, E]
    dec_oh = jnp.where(
        dec_ids_ref[...] == jax.lax.broadcasted_iota(jnp.int32, (S2 * B, V), 1),
        1.0, 0.0)
    emb_dec = (jnp.dot(dec_oh, embed, preferred_element_type=f32)
               * drop_ref[...])                                       # [S2*B, E]

    # ---- encoder: hoisted input projections (one big matmul per direction) ----
    xg_f = jnp.dot(emb_enc, wif_ref[...], preferred_element_type=f32) + bf_ref[...]
    xg_b = jnp.dot(emb_enc, wib_ref[...], preferred_element_type=f32) + bb_ref[...]
    whf = whf_ref[...]
    whb = whb_ref[...]

    # Fused fwd/bwd recurrence; rows [:B] = forward state, rows [B:] = backward.
    h = jnp.zeros((2 * B, H), f32)
    c = jnp.zeros((2 * B, H), f32)
    for t in range(S):                         # static unroll, all slices static
        gf = (xg_f[t * B:(t + 1) * B, :]
              + jnp.dot(h[:B], whf, preferred_element_type=f32))
        gb = (xg_b[(S - 1 - t) * B:(S - t) * B, :]
              + jnp.dot(h[B:], whb, preferred_element_type=f32))
        gates = jnp.concatenate([gf, gb], axis=0)          # [2B, 4H]
        sg = jax.nn.sigmoid(gates)                         # one EUP pass (i,f,o)
        th = jnp.tanh(gates)                               # one EUP pass (g)
        i_g = sg[:, 0 * H:1 * H]
        f_g = sg[:, 1 * H:2 * H]
        g_g = th[:, 2 * H:3 * H]
        o_g = sg[:, 3 * H:4 * H]
        c = f_g * c + i_g * g_g
        h = o_g * jnp.tanh(c)

    final_state = jnp.concatenate([h[:B], h[B:]], axis=1)             # [B, 2H]

    # ---- VAE head: mu / logvar / reparameterize / KLD ----
    mu = jnp.dot(final_state, wmu_ref[...], preferred_element_type=f32) + bmu_ref[...]
    logvar = jnp.dot(final_state, wlv_ref[...], preferred_element_type=f32) + blv_ref[...]
    std = jnp.exp(0.5 * logvar)
    z = noise_ref[...] * std + mu                                     # [B, L]
    kld_per = -0.5 * jnp.sum(1.0 + logvar - mu * mu - jnp.exp(logvar),
                             axis=1, keepdims=True)                   # [B, 1]
    kld_ref[...] = jnp.mean(kld_per, axis=0, keepdims=True)           # [1, 1]

    # init_state = relu(latent(z)).view(-1, 1, B, DEC_H); h0 = view[0], c0 = view[1].
    # The raw torch .view() splits the flat [B, 2*DEC_H] buffer, so (for B=2)
    # h0 is batch-0's projection split in half and c0 is batch-1's (quirk kept).
    init_full = jnp.maximum(
        jnp.dot(z, wlat_ref[...], preferred_element_type=f32) + blat_ref[...], 0.0)
    h0 = jnp.concatenate([init_full[0:1, :Hd], init_full[0:1, Hd:]], axis=0)   # [B, Hd]
    c0 = jnp.concatenate([init_full[1:2, :Hd], init_full[1:2, Hd:]], axis=0)   # [B, Hd]

    # ---- decoder: hoisted X @ W_ih_x; z contribution is constant over time ----
    xg_d = jnp.dot(emb_dec, wix_ref[...], preferred_element_type=f32) + bd_ref[...]
    zc = jnp.dot(z, wiz_ref[...], preferred_element_type=f32)         # [B, 4Hd]
    whd = whd_ref[...]

    h_d, c_d = h0, c0
    hs = []
    for t in range(S2):                        # static unroll
        g = (xg_d[t * B:(t + 1) * B, :] + zc
             + jnp.dot(h_d, whd, preferred_element_type=f32))
        sg = jax.nn.sigmoid(g)
        th = jnp.tanh(g)
        i_g = sg[:, 0 * Hd:1 * Hd]
        f_g = sg[:, 1 * Hd:2 * Hd]
        g_g = th[:, 2 * Hd:3 * Hd]
        o_g = sg[:, 3 * Hd:4 * Hd]
        c_d = f_g * c_d + i_g * g_g
        h_d = o_g * jnp.tanh(c_d)
        hs.append(h_d)

    hN_ref[...] = h_d
    cN_ref[...] = c_d

    # deferred vocab projection: one matmul for all timesteps (off the chain)
    hs_all = jnp.concatenate(hs, axis=0)                              # [S2*B, Hd]
    logits_ref[...] = (jnp.dot(hs_all, wfc_ref[...], preferred_element_type=f32)
                       + bfc_ref[...])                                # [S2*B, V]


# ---------------------------------------------------------------------------
# pallas_call wrapper (everything VMEM-resident; shapes are tiny, no grid)
# ---------------------------------------------------------------------------
_N_INPUTS = 23

_rvae_call = pl.pallas_call(
    rvae_kernel,
    out_shape=(
        jax.ShapeDtypeStruct(((SEQ + 2) * BATCH, VOCAB), jnp.float32),  # logits (time-major, flat)
        jax.ShapeDtypeStruct((BATCH, DEC_H), jnp.float32),              # h_N
        jax.ShapeDtypeStruct((BATCH, DEC_H), jnp.float32),              # c_N
        jax.ShapeDtypeStruct((1, 1), jnp.float32),                      # KLD
    ),
    in_specs=[pl.BlockSpec(memory_space=pltpu.MemorySpace.VMEM)] * _N_INPUTS,
    out_specs=tuple([pl.BlockSpec(memory_space=pltpu.MemorySpace.VMEM)] * 4),
)


# ---------------------------------------------------------------------------
# Parameter init (deterministic, synthetic)
# ---------------------------------------------------------------------------
def init_weights(key):
    names_shapes = [
        ("embed",  (VOCAB, EMBED)),
        ("w_ih_f", (EMBED, 4 * ENC_H)), ("w_hh_f", (ENC_H, 4 * ENC_H)), ("b_f", (1, 4 * ENC_H)),
        ("w_ih_b", (EMBED, 4 * ENC_H)), ("w_hh_b", (ENC_H, 4 * ENC_H)), ("b_b", (1, 4 * ENC_H)),
        ("w_mu",   (2 * ENC_H, LATENT)), ("b_mu", (1, LATENT)),
        ("w_lv",   (2 * ENC_H, LATENT)), ("b_lv", (1, LATENT)),
        ("w_lat",  (LATENT, 2 * DEC_H)), ("b_lat", (1, 2 * DEC_H)),
        ("w_ih_x", (EMBED, 4 * DEC_H)),  ("w_ih_z", (LATENT, 4 * DEC_H)),
        ("w_hh_d", (DEC_H, 4 * DEC_H)),  ("b_d", (1, 4 * DEC_H)),
        ("w_fc",   (DEC_H, VOCAB)),      ("b_fc", (1, VOCAB)),
    ]
    keys = jax.random.split(key, len(names_shapes))
    return {name: 0.08 * jax.random.normal(k, shape, jnp.float32)
            for (name, shape), k in zip(names_shapes, keys)}


# ---------------------------------------------------------------------------
# Forward pass (wrapper only reshapes token ids / builds noise & dropout mask)
# ---------------------------------------------------------------------------
def rvae_forward(w, encode_input, decode_input, drop_rate, key):
    """
    encode_input: [batch, seq_len] int tokens
    decode_input: [batch, seq_len + 2] int tokens
    returns (logits [batch, seq_len+2, vocab], (h_N, c_N), KLD scalar)
    """
    noise_key, drop_key = jax.random.split(key)
    B, S = encode_input.shape
    S2 = decode_input.shape[1]

    # token ids, time-major & flattened (row = t * B + b) for the in-kernel
    # one-hot embedding matmul
    enc_ids = encode_input.astype(jnp.int32).T.reshape(S * B, 1)
    dec_ids = decode_input.astype(jnp.int32).T.reshape(S2 * B, 1)

    noise = jax.random.normal(noise_key, (B, LATENT), jnp.float32)
    if drop_rate > 0.0:
        keep = jax.random.bernoulli(drop_key, 1.0 - drop_rate, (S2 * B, EMBED))
        drop_mask = keep.astype(jnp.float32) / (1.0 - drop_rate)
    else:
        drop_mask = jnp.ones((S2 * B, EMBED), jnp.float32)

    logits_flat, hN, cN, kld = _rvae_call(
        enc_ids, dec_ids, drop_mask, noise,
        w["embed"],
        w["w_ih_f"], w["w_hh_f"], w["b_f"],
        w["w_ih_b"], w["w_hh_b"], w["b_b"],
        w["w_mu"], w["b_mu"], w["w_lv"], w["b_lv"],
        w["w_lat"], w["b_lat"],
        w["w_ih_x"], w["w_ih_z"], w["w_hh_d"], w["b_d"],
        w["w_fc"], w["b_fc"])

    logits = logits_flat.reshape(S2, B, VOCAB).transpose(1, 0, 2)     # [B, S2, V]
    final_state = (hN[None, :, :], cN[None, :, :])                    # ([1,B,H], [1,B,H])
    return logits, final_state, kld[0, 0]


rvae_forward_jit = jax.jit(rvae_forward, static_argnames=("drop_rate",))


if __name__ == "__main__":
    key = jax.random.PRNGKey(0)
    k_enc, k_dec, k_fwd = jax.random.split(key, 3)

    encode_input = jax.random.randint(k_enc, (BATCH, SEQ), 0, VOCAB)
    decode_input = jax.random.randint(k_dec, (BATCH, SEQ + 2), 0, VOCAB)
    weights = init_weights(jax.random.PRNGKey(42))

    logits, (h_n, c_n), kld = rvae_forward_jit(
        weights, encode_input, decode_input, drop_rate=0.0, key=k_fwd)
    jax.block_until_ready((logits, h_n, c_n, kld))

    assert logits.shape == (BATCH, SEQ + 2, VOCAB)
    assert h_n.shape == (1, BATCH, DEC_H) and c_n.shape == (1, BATCH, DEC_H)
    assert kld.shape == ()
    assert bool(jnp.all(jnp.isfinite(logits))) and bool(jnp.isfinite(kld))
    print("KERNEL_OK")
</pallas_src>

<mosaic_0001>
module attributes {stable_mosaic.version = 11 : i64} {
  func.func @rvae_kernel(%arg0: memref<16x1xi32, #tpu.memory_space<vmem>>, %arg1: memref<20x1xi32, #tpu.memory_space<vmem>>, %arg2: memref<20x32xf32, #tpu.memory_space<vmem>>, %arg3: memref<2x16xf32, #tpu.memory_space<vmem>>, %arg4: memref<64x32xf32, #tpu.memory_space<vmem>>, %arg5: memref<32x128xf32, #tpu.memory_space<vmem>>, %arg6: memref<32x128xf32, #tpu.memory_space<vmem>>, %arg7: memref<1x128xf32, #tpu.memory_space<vmem>>, %arg8: memref<32x128xf32, #tpu.memory_space<vmem>>, %arg9: memref<32x128xf32, #tpu.memory_space<vmem>>, %arg10: memref<1x128xf32, #tpu.memory_space<vmem>>, %arg11: memref<64x16xf32, #tpu.memory_space<vmem>>, %arg12: memref<1x16xf32, #tpu.memory_space<vmem>>, %arg13: memref<64x16xf32, #tpu.memory_space<vmem>>, %arg14: memref<1x16xf32, #tpu.memory_space<vmem>>, %arg15: memref<16x64xf32, #tpu.memory_space<vmem>>, %arg16: memref<1x64xf32, #tpu.memory_space<vmem>>, %arg17: memref<32x128xf32, #tpu.memory_space<vmem>>, %arg18: memref<16x128xf32, #tpu.memory_space<vmem>>, %arg19: memref<32x128xf32, #tpu.memory_space<vmem>>, %arg20: memref<1x128xf32, #tpu.memory_space<vmem>>, %arg21: memref<32x64xf32, #tpu.memory_space<vmem>>, %arg22: memref<1x64xf32, #tpu.memory_space<vmem>>, %arg23: memref<20x64xf32, #tpu.memory_space<vmem>>, %arg24: memref<2x32xf32, #tpu.memory_space<vmem>>, %arg25: memref<2x32xf32, #tpu.memory_space<vmem>>, %arg26: memref<1x1xf32, #tpu.memory_space<vmem>>) attributes {dimension_semantics = [], scalar_prefetch = 0 : i64, scratch_operands = 0 : i64, tpu.core_type = #tpu.core_type<tc>} {
    %c0 = arith.constant 0 : index
    %c0_0 = arith.constant 0 : index
    %0 = vector.load %arg4[%c0, %c0_0] : memref<64x32xf32, #tpu.memory_space<vmem>>, vector<64x32xf32>
    %c0_1 = arith.constant 0 : index
    %c0_2 = arith.constant 0 : index
    %1 = vector.load %arg0[%c0_1, %c0_2] : memref<16x1xi32, #tpu.memory_space<vmem>>, vector<16x1xi32>
    %2 = tpu.iota {dimensions = array<i32: 1>} : vector<16x64xi32>
    %3 = vector.broadcast %1 : vector<16x1xi32> to vector<16x64xi32>
    %4 = arith.cmpi eq, %3, %2 : vector<16x64xi32>
    %cst = arith.constant 1.000000e+00 : f32
    %cst_3 = arith.constant 0.000000e+00 : f32
    %5 = vector.broadcast %cst : f32 to vector<16x64xf32>
    %6 = vector.broadcast %cst_3 : f32 to vector<16x64xf32>
    %7 = arith.select %4, %5, %6 : vector<16x64xi1>, vector<16x64xf32>
    %cst_4 = arith.constant dense<0.000000e+00> : vector<16x32xf32>
    %8 = tpu.matmul %7, %0, %cst_4 {dimension_numbers = #tpu.dot_dimension_numbers<[1], [0], [0], [1], [0, 0, 1, 1], [], []>} : vector<16x64xf32>, vector<64x32xf32>, vector<16x32xf32> -> vector<16x32xf32>
    %c0_5 = arith.constant 0 : index
    %c0_6 = arith.constant 0 : index
    %9 = vector.load %arg1[%c0_5, %c0_6] : memref<20x1xi32, #tpu.memory_space<vmem>>, vector<20x1xi32>
    %10 = tpu.iota {dimensions = array<i32: 1>} : vector<20x64xi32>
    %11 = vector.broadcast %9 : vector<20x1xi32> to vector<20x64xi32>
    %12 = arith.cmpi eq, %11, %10 : vector<20x64xi32>
    %cst_7 = arith.constant 1.000000e+00 : f32
    %cst_8 = arith.constant 0.000000e+00 : f32
    %13 = vector.broadcast %cst_7 : f32 to vector<20x64xf32>
    %14 = vector.broadcast %cst_8 : f32 to vector<20x64xf32>
    %15 = arith.select %12, %13, %14 : vector<20x64xi1>, vector<20x64xf32>
    %cst_9 = arith.constant dense<0.000000e+00> : vector<20x32xf32>
    %16 = tpu.matmul %15, %0, %cst_9 {dimension_numbers = #tpu.dot_dimension_numbers<[1], [0], [0], [1], [0, 0, 1, 1], [], []>} : vector<20x64xf32>, vector<64x32xf32>, vector<20x32xf32> -> vector<20x32xf32>
    %c0_10 = arith.constant 0 : index
    %c0_11 = arith.constant 0 : index
    %17 = vector.load %arg2[%c0_10, %c0_11] : memref<20x32xf32, #tpu.memory_space<vmem>>, vector<20x32xf32>
    %18 = arith.mulf %16, %17 : vector<20x32xf32>
    %c0_12 = arith.constant 0 : index
    %c0_13 = arith.constant 0 : index
    %19 = vector.load %arg5[%c0_12, %c0_13] : memref<32x128xf32, #tpu.memory_space<vmem>>, vector<32x128xf32>
    %cst_14 = arith.constant dense<0.000000e+00> : vector<16x128xf32>
    %20 = tpu.matmul %8, %19, %cst_14 {dimension_numbers = #tpu.dot_dimension_numbers<[1], [0], [0], [1], [0, 0, 1, 1], [], []>} : vector<16x32xf32>, vector<32x128xf32>, vector<16x128xf32> -> vector<16x128xf32>
    %c0_15 = arith.constant 0 : index
    %c0_16 = arith.constant 0 : index
    %21 = vector.load %arg7[%c0_15, %c0_16] : memref<1x128xf32, #tpu.memory_space<vmem>>, vector<1x128xf32>
    %22 = vector.broadcast %21 : vector<1x128xf32> to vector<16x128xf32>
    %23 = arith.addf %20, %22 : vector<16x128xf32>
    %c0_17 = arith.constant 0 : index
    %c0_18 = arith.constant 0 : index
    %24 = vector.load %arg8[%c0_17, %c0_18] : memref<32x128xf32, #tpu.memory_space<vmem>>, vector<32x128xf32>
    %cst_19 = arith.constant dense<0.000000e+00> : vector<16x128xf32>
    %25 = tpu.matmul %8, %24, %cst_19 {dimension_numbers = #tpu.dot_dimension_numbers<[1], [0], [0], [1], [0, 0, 1, 1], [], []>} : vector<16x32xf32>, vector<32x128xf32>, vector<16x128xf32> -> vector<16x128xf32>
    %c0_20 = arith.constant 0 : index
    %c0_21 = arith.constant 0 : index
    %26 = vector.load %arg10[%c0_20, %c0_21] : memref<1x128xf32, #tpu.memory_space<vmem>>, vector<1x128xf32>
    %27 = vector.broadcast %26 : vector<1x128xf32> to vector<16x128xf32>
    %28 = arith.addf %25, %27 : vector<16x128xf32>
    %c0_22 = arith.constant 0 : index
    %c0_23 = arith.constant 0 : index
    %29 = vector.load %arg6[%c0_22, %c0_23] : memref<32x128xf32, #tpu.memory_space<vmem>>, vector<32x128xf32>
    %c0_24 = arith.constant 0 : index
    %c0_25 = arith.constant 0 : index
    %30 = vector.load %arg9[%c0_24, %c0_25] : memref<32x128xf32, #tpu.memory_space<vmem>>, vector<32x128xf32>
    %cst_26 = arith.constant 0.000000e+00 : f32
    %31 = vector.broadcast %cst_26 : f32 to vector<4x32xf32>
    %cst_27 = arith.constant 0.000000e+00 : f32
    %32 = vector.broadcast %cst_27 : f32 to vector<4x32xf32>
    %33 = vector.extract_strided_slice %23 {offsets = [0, 0], sizes = [2, 128], strides = [1, 1]} : vector<16x128xf32> to vector<2x128xf32>
    %34 = vector.extract_strided_slice %31 {offsets = [0, 0], sizes = [2, 32], strides = [1, 1]} : vector<4x32xf32> to vector<2x32xf32>
    %cst_28 = arith.constant dense<0.000000e+00> : vector<2x128xf32>
    %35 = tpu.matmul %34, %29, %cst_28 {dimension_numbers = #tpu.dot_dimension_numbers<[1], [0], [0], [1], [0, 0, 1, 1], [], []>} : vector<2x32xf32>, vector<32x128xf32>, vector<2x128xf32> -> vector<2x128xf32>
    %36 = arith.addf %33, %35 : vector<2x128xf32>
    %37 = vector.extract_strided_slice %28 {offsets = [14, 0], sizes = [2, 128], strides = [1, 1]} : vector<16x128xf32> to vector<2x128xf32>
    %38 = vector.extract_strided_slice %31 {offsets = [2, 0], sizes = [2, 32], strides = [1, 1]} : vector<4x32xf32> to vector<2x32xf32>
    %cst_29 = arith.constant dense<0.000000e+00> : vector<2x128xf32>
    %39 = tpu.matmul %38, %30, %cst_29 {dimension_numbers = #tpu.dot_dimension_numbers<[1], [0], [0], [1], [0, 0, 1, 1], [], []>} : vector<2x32xf32>, vector<32x128xf32>, vector<2x128xf32> -> vector<2x128xf32>
    %40 = arith.addf %37, %39 : vector<2x128xf32>
    %41 = tpu.concatenate %36, %40 in 0 : vector<2x128xf32>, vector<2x128xf32> -> vector<4x128xf32>
    %42 = arith.negf %41 : vector<4x128xf32>
    %43 = math.exp %42 : vector<4x128xf32>
    %cst_30 = arith.constant 1.000000e+00 : f32
    %44 = vector.broadcast %cst_30 : f32 to vector<4x128xf32>
    %45 = arith.addf %44, %43 : vector<4x128xf32>
    %46 = arith.divf %44, %45 : vector<4x128xf32>
    %47 = math.tanh %41 : vector<4x128xf32>
    %48 = vector.extract_strided_slice %46 {offsets = [0, 0], sizes = [4, 32], strides = [1, 1]} : vector<4x128xf32> to vector<4x32xf32>
    %49 = vector.extract_strided_slice %46 {offsets = [0, 32], sizes = [4, 32], strides = [1, 1]} : vector<4x128xf32> to vector<4x32xf32>
    %50 = vector.extract_strided_slice %47 {offsets = [0, 64], sizes = [4, 32], strides = [1, 1]} : vector<4x128xf32> to vector<4x32xf32>
    %51 = vector.extract_strided_slice %46 {offsets = [0, 96], sizes = [4, 32], strides = [1, 1]} : vector<4x128xf32> to vector<4x32xf32>
    %52 = arith.mulf %49, %32 : vector<4x32xf32>
    %53 = arith.mulf %48, %50 : vector<4x32xf32>
    %54 = arith.addf %52, %53 : vector<4x32xf32>
    %55 = math.tanh %54 : vector<4x32xf32>
    %56 = arith.mulf %51, %55 : vector<4x32xf32>
    %57 = vector.extract_strided_slice %23 {offsets = [2, 0], sizes = [2, 128], strides = [1, 1]} : vector<16x128xf32> to vector<2x128xf32>
    %58 = vector.extract_strided_slice %56 {offsets = [0, 0], sizes = [2, 32], strides = [1, 1]} : vector<4x32xf32> to vector<2x32xf32>
    %cst_31 = arith.constant dense<0.000000e+00> : vector<2x128xf32>
    %59 = tpu.matmul %58, %29, %cst_31 {dimension_numbers = #tpu.dot_dimension_numbers<[1], [0], [0], [1], [0, 0, 1, 1], [], []>} : vector<2x32xf32>, vector<32x128xf32>, vector<2x128xf32> -> vector<2x128xf32>
    %60 = arith.addf %57, %59 : vector<2x128xf32>
    %61 = vector.extract_strided_slice %28 {offsets = [12, 0], sizes = [2, 128], strides = [1, 1]} : vector<16x128xf32> to vector<2x128xf32>
    %62 = vector.extract_strided_slice %56 {offsets = [2, 0], sizes = [2, 32], strides = [1, 1]} : vector<4x32xf32> to vector<2x32xf32>
    %cst_32 = arith.constant dense<0.000000e+00> : vector<2x128xf32>
    %63 = tpu.matmul %62, %30, %cst_32 {dimension_numbers = #tpu.dot_dimension_numbers<[1], [0], [0], [1], [0, 0, 1, 1], [], []>} : vector<2x32xf32>, vector<32x128xf32>, vector<2x128xf32> -> vector<2x128xf32>
    %64 = arith.addf %61, %63 : vector<2x128xf32>
    %65 = tpu.concatenate %60, %64 in 0 : vector<2x128xf32>, vector<2x128xf32> -> vector<4x128xf32>
    %66 = arith.negf %65 : vector<4x128xf32>
    %67 = math.exp %66 : vector<4x128xf32>
    %cst_33 = arith.constant 1.000000e+00 : f32
    %68 = vector.broadcast %cst_33 : f32 to vector<4x128xf32>
    %69 = arith.addf %68, %67 : vector<4x128xf32>
    %70 = arith.divf %68, %69 : vector<4x128xf32>
    %71 = math.tanh %65 : vector<4x128xf32>
    %72 = vector.extract_strided_slice %70 {offsets = [0, 0], sizes = [4, 32], strides = [1, 1]} : vector<4x128xf32> to vector<4x32xf32>
    %73 = vector.extract_strided_slice %70 {offsets = [0, 32], sizes = [4, 32], strides = [1, 1]} : vector<4x128xf32> to vector<4x32xf32>
    %74 = vector.extract_strided_slice %71 {offsets = [0, 64], sizes = [4, 32], strides = [1, 1]} : vector<4x128xf32> to vector<4x32xf32>
    %75 = vector.extract_strided_slice %70 {offsets = [0, 96], sizes = [4, 32], strides = [1, 1]} : vector<4x128xf32> to vector<4x32xf32>
    %76 = arith.mulf %73, %54 : vector<4x32xf32>
    %77 = arith.mulf %72, %74 : vector<4x32xf32>
    %78 = arith.addf %76, %77 : vector<4x32xf32>
    %79 = math.tanh %78 : vector<4x32xf32>
    %80 = arith.mulf %75, %79 : vector<4x32xf32>
    %81 = vector.extract_strided_slice %23 {offsets = [4, 0], sizes = [2, 128], strides = [1, 1]} : vector<16x128xf32> to vector<2x128xf32>
    %82 = vector.extract_strided_slice %80 {offsets = [0, 0], sizes = [2, 32], strides = [1, 1]} : vector<4x32xf32> to vector<2x32xf32>
    %cst_34 = arith.constant dense<0.000000e+00> : vector<2x128xf32>
    %83 = tpu.matmul %82, %29, %cst_34 {dimension_numbers = #tpu.dot_dimension_numbers<[1], [0], [0], [1], [0, 0, 1, 1], [], []>} : vector<2x32xf32>, vector<32x128xf32>, vector<2x128xf32> -> vector<2x128xf32>
    %84 = arith.addf %81, %83 : vector<2x128xf32>
    %85 = vector.extract_strided_slice %28 {offsets = [10, 0], sizes = [2, 128], strides = [1, 1]} : vector<16x128xf32> to vector<2x128xf32>
    %86 = vector.extract_strided_slice %80 {offsets = [2, 0], sizes = [2, 32], strides = [1, 1]} : vector<4x32xf32> to vector<2x32xf32>
    %cst_35 = arith.constant dense<0.000000e+00> : vector<2x128xf32>
    %87 = tpu.matmul %86, %30, %cst_35 {dimension_numbers = #tpu.dot_dimension_numbers<[1], [0], [0], [1], [0, 0, 1, 1], [], []>} : vector<2x32xf32>, vector<32x128xf32>, vector<2x128xf32> -> vector<2x128xf32>
    %88 = arith.addf %85, %87 : vector<2x128xf32>
    %89 = tpu.concatenate %84, %88 in 0 : vector<2x128xf32>, vector<2x128xf32> -> vector<4x128xf32>
    %90 = arith.negf %89 : vector<4x128xf32>
    %91 = math.exp %90 : vector<4x128xf32>
    %cst_36 = arith.constant 1.000000e+00 : f32
    %92 = vector.broadcast %cst_36 : f32 to vector<4x128xf32>
    %93 = arith.addf %92, %91 : vector<4x128xf32>
    %94 = arith.divf %92, %93 : vector<4x128xf32>
    %95 = math.tanh %89 : vector<4x128xf32>
    %96 = vector.extract_strided_slice %94 {offsets = [0, 0], sizes = [4, 32], strides = [1, 1]} : vector<4x128xf32> to vector<4x32xf32>
    %97 = vector.extract_strided_slice %94 {offsets = [0, 32], sizes = [4, 32], strides = [1, 1]} : vector<4x128xf32> to vector<4x32xf32>
    %98 = vector.extract_strided_slice %95 {offsets = [0, 64], sizes = [4, 32], strides = [1, 1]} : vector<4x128xf32> to vector<4x32xf32>
    %99 = vector.extract_strided_slice %94 {offsets = [0, 96], sizes = [4, 32], strides = [1, 1]} : vector<4x128xf32> to vector<4x32xf32>
    %100 = arith.mulf %97, %78 : vector<4x32xf32>
    %101 = arith.mulf %96, %98 : vector<4x32xf32>
    %102 = arith.addf %100, %101 : vector<4x32xf32>
    %103 = math.tanh %102 : vector<4x32xf32>
    %104 = arith.mulf %99, %103 : vector<4x32xf32>
    %105 = vector.extract_strided_slice %23 {offsets = [6, 0], sizes = [2, 128], strides = [1, 1]} : vector<16x128xf32> to vector<2x128xf32>
    %106 = vector.extract_strided_slice %104 {offsets = [0, 0], sizes = [2, 32], strides = [1, 1]} : vector<4x32xf32> to vector<2x32xf32>
    %cst_37 = arith.constant dense<0.000000e+00> : vector<2x128xf32>
    %107 = tpu.matmul %106, %29, %cst_37 {dimension_numbers = #tpu.dot_dimension_numbers<[1], [0], [0], [1], [0, 0, 1, 1], [], []>} : vector<2x32xf32>, vector<32x128xf32>, vector<2x128xf32> -> vector<2x128xf32>
    %108 = arith.addf %105, %107 : vector<2x128xf32>
    %109 = vector.extract_strided_slice %28 {offsets = [8, 0], sizes = [2, 128], strides = [1, 1]} : vector<16x128xf32> to vector<2x128xf32>
    %110 = vector.extract_strided_slice %104 {offsets = [2, 0], sizes = [2, 32], strides = [1, 1]} : vector<4x32xf32> to vector<2x32xf32>
    %cst_38 = arith.constant dense<0.000000e+00> : vector<2x128xf32>
    %111 = tpu.matmul %110, %30, %cst_38 {dimension_numbers = #tpu.dot_dimension_numbers<[1], [0], [0], [1], [0, 0, 1, 1], [], []>} : vector<2x32xf32>, vector<32x128xf32>, vector<2x128xf32> -> vector<2x128xf32>
    %112 = arith.addf %109, %111 : vector<2x128xf32>
    %113 = tpu.concatenate %108, %112 in 0 : vector<2x128xf32>, vector<2x128xf32> -> vector<4x128xf32>
    %114 = arith.negf %113 : vector<4x128xf32>
    %115 = math.exp %114 : vector<4x128xf32>
    %cst_39 = arith.constant 1.000000e+00 : f32
    %116 = vector.broadcast %cst_39 : f32 to vector<4x128xf32>
    %117 = arith.addf %116, %115 : vector<4x128xf32>
    %118 = arith.divf %116, %117 : vector<4x128xf32>
    %119 = math.tanh %113 : vector<4x128xf32>
    %120 = vector.extract_strided_slice %118 {offsets = [0, 0], sizes = [4, 32], strides = [1, 1]} : vector<4x128xf32> to vector<4x32xf32>
    %121 = vector.extract_strided_slice %118 {offsets = [0, 32], sizes = [4, 32], strides = [1, 1]} : vector<4x128xf32> to vector<4x32xf32>
    %122 = vector.extract_strided_slice %119 {offsets = [0, 64], sizes = [4, 32], strides = [1, 1]} : vector<4x128xf32> to vector<4x32xf32>
    %123 = vector.extract_strided_slice %118 {offsets = [0, 96], sizes = [4, 32], strides = [1, 1]} : vector<4x128xf32> to vector<4x32xf32>
    %124 = arith.mulf %121, %102 : vector<4x32xf32>
    %125 = arith.mulf %120, %122 : vector<4x32xf32>
    %126 = arith.addf %124, %125 : vector<4x32xf32>
    %127 = math.tanh %126 : vector<4x32xf32>
    %128 = arith.mulf %123, %127 : vector<4x32xf32>
    %129 = vector.extract_strided_slice %23 {offsets = [8, 0], sizes = [2, 128], strides = [1, 1]} : vector<16x128xf32> to vector<2x128xf32>
    %130 = vector.extract_strided_slice %128 {offsets = [0, 0], sizes = [2, 32], strides = [1, 1]} : vector<4x32xf32> to vector<2x32xf32>
    %cst_40 = arith.constant dense<0.000000e+00> : vector<2x128xf32>
    %131 = tpu.matmul %130, %29, %cst_40 {dimension_numbers = #tpu.dot_dimension_numbers<[1], [0], [0], [1], [0, 0, 1, 1], [], []>} : vector<2x32xf32>, vector<32x128xf32>, vector<2x128xf32> -> vector<2x128xf32>
    %132 = arith.addf %129, %131 : vector<2x128xf32>
    %133 = vector.extract_strided_slice %28 {offsets = [6, 0], sizes = [2, 128], strides = [1, 1]} : vector<16x128xf32> to vector<2x128xf32>
    %134 = vector.extract_strided_slice %128 {offsets = [2, 0], sizes = [2, 32], strides = [1, 1]} : vector<4x32xf32> to vector<2x32xf32>
    %cst_41 = arith.constant dense<0.000000e+00> : vector<2x128xf32>
    %135 = tpu.matmul %134, %30, %cst_41 {dimension_numbers = #tpu.dot_dimension_numbers<[1], [0], [0], [1], [0, 0, 1, 1], [], []>} : vector<2x32xf32>, vector<32x128xf32>, vector<2x128xf32> -> vector<2x128xf32>
    %136 = arith.addf %133, %135 : vector<2x128xf32>
    %137 = tpu.concatenate %132, %136 in 0 : vector<2x128xf32>, vector<2x128xf32> -> vector<4x128xf32>
    %138 = arith.negf %137 : vector<4x128xf32>
    %139 = math.exp %138 : vector<4x128xf32>
    %cst_42 = arith.constant 1.000000e+00 : f32
    %140 = vector.broadcast %cst_42 : f32 to vector<4x128xf32>
    %141 = arith.addf %140, %139 : vector<4x128xf32>
    %142 = arith.divf %140, %141 : vector<4x128xf32>
    %143 = math.tanh %137 : vector<4x128xf32>
    %144 = vector.extract_strided_slice %142 {offsets = [0, 0], sizes = [4, 32], strides = [1, 1]} : vector<4x128xf32> to vector<4x32xf32>
    %145 = vector.extract_strided_slice %142 {offsets = [0, 32], sizes = [4, 32], strides = [1, 1]} : vector<4x128xf32> to vector<4x32xf32>
    %146 = vector.extract_strided_slice %143 {offsets = [0, 64], sizes = [4, 32], strides = [1, 1]} : vector<4x128xf32> to vector<4x32xf32>
    %147 = vector.extract_strided_slice %142 {offsets = [0, 96], sizes = [4, 32], strides = [1, 1]} : vector<4x128xf32> to vector<4x32xf32>
    %148 = arith.mulf %145, %126 : vector<4x32xf32>
    %149 = arith.mulf %144, %146 : vector<4x32xf32>
    %150 = arith.addf %148, %149 : vector<4x32xf32>
    %151 = math.tanh %150 : vector<4x32xf32>
    %152 = arith.mulf %147, %151 : vector<4x32xf32>
    %153 = vector.extract_strided_slice %23 {offsets = [10, 0], sizes = [2, 128], strides = [1, 1]} : vector<16x128xf32> to vector<2x128xf32>
    %154 = vector.extract_strided_slice %152 {offsets = [0, 0], sizes = [2, 32], strides = [1, 1]} : vector<4x32xf32> to vector<2x32xf32>
    %cst_43 = arith.constant dense<0.000000e+00> : vector<2x128xf32>
    %155 = tpu.matmul %154, %29, %cst_43 {dimension_numbers = #tpu.dot_dimension_numbers<[1], [0], [0], [1], [0, 0, 1, 1], [], []>} : vector<2x32xf32>, vector<32x128xf32>, vector<2x128xf32> -> vector<2x128xf32>
    %156 = arith.addf %153, %155 : vector<2x128xf32>
    %157 = vector.extract_strided_slice %28 {offsets = [4, 0], sizes = [2, 128], strides = [1, 1]} : vector<16x128xf32> to vector<2x128xf32>
    %158 = vector.extract_strided_slice %152 {offsets = [2, 0], sizes = [2, 32], strides = [1, 1]} : vector<4x32xf32> to vector<2x32xf32>
    %cst_44 = arith.constant dense<0.000000e+00> : vector<2x128xf32>
    %159 = tpu.matmul %158, %30, %cst_44 {dimension_numbers = #tpu.dot_dimension_numbers<[1], [0], [0], [1], [0, 0, 1, 1], [], []>} : vector<2x32xf32>, vector<32x128xf32>, vector<2x128xf32> -> vector<2x128xf32>
    %160 = arith.addf %157, %159 : vector<2x128xf32>
    %161 = tpu.concatenate %156, %160 in 0 : vector<2x128xf32>, vector<2x128xf32> -> vector<4x128xf32>
    %162 = arith.negf %161 : vector<4x128xf32>
    %163 = math.exp %162 : vector<4x128xf32>
    %cst_45 = arith.constant 1.000000e+00 : f32
    %164 = vector.broadcast %cst_45 : f32 to vector<4x128xf32>
    %165 = arith.addf %164, %163 : vector<4x128xf32>
    %166 = arith.divf %164, %165 : vector<4x128xf32>
    %167 = math.tanh %161 : vector<4x128xf32>
    %168 = vector.extract_strided_slice %166 {offsets = [0, 0], sizes = [4, 32], strides = [1, 1]} : vector<4x128xf32> to vector<4x32xf32>
    %169 = vector.extract_strided_slice %166 {offsets = [0, 32], sizes = [4, 32], strides = [1, 1]} : vector<4x128xf32> to vector<4x32xf32>
    %170 = vector.extract_strided_slice %167 {offsets = [0, 64], sizes = [4, 32], strides = [1, 1]} : vector<4x128xf32> to vector<4x32xf32>
    %171 = vector.extract_strided_slice %166 {offsets = [0, 96], sizes = [4, 32], strides = [1, 1]} : vector<4x128xf32> to vector<4x32xf32>
    %172 = arith.mulf %169, %150 : vector<4x32xf32>
    %173 = arith.mulf %168, %170 : vector<4x32xf32>
    %174 = arith.addf %172, %173 : vector<4x32xf32>
    %175 = math.tanh %174 : vector<4x32xf32>
    %176 = arith.mulf %171, %175 : vector<4x32xf32>
    %177 = vector.extract_strided_slice %23 {offsets = [12, 0], sizes = [2, 128], strides = [1, 1]} : vector<16x128xf32> to vector<2x128xf32>
    %178 = vector.extract_strided_slice %176 {offsets = [0, 0], sizes = [2, 32], strides = [1, 1]} : vector<4x32xf32> to vector<2x32xf32>
    %cst_46 = arith.constant dense<0.000000e+00> : vector<2x128xf32>
    %179 = tpu.matmul %178, %29, %cst_46 {dimension_numbers = #tpu.dot_dimension_numbers<[1], [0], [0], [1], [0, 0, 1, 1], [], []>} : vector<2x32xf32>, vector<32x128xf32>, vector<2x128xf32> -> vector<2x128xf32>
    %180 = arith.addf %177, %179 : vector<2x128xf32>
    %181 = vector.extract_strided_slice %28 {offsets = [2, 0], sizes = [2, 128], strides = [1, 1]} : vector<16x128xf32> to vector<2x128xf32>
    %182 = vector.extract_strided_slice %176 {offsets = [2, 0], sizes = [2, 32], strides = [1, 1]} : vector<4x32xf32> to vector<2x32xf32>
    %cst_47 = arith.constant dense<0.000000e+00> : vector<2x128xf32>
    %183 = tpu.matmul %182, %30, %cst_47 {dimension_numbers = #tpu.dot_dimension_numbers<[1], [0], [0], [1], [0, 0, 1, 1], [], []>} : vector<2x32xf32>, vector<32x128xf32>, vector<2x128xf32> -> vector<2x128xf32>
    %184 = arith.addf %181, %183 : vector<2x128xf32>
    %185 = tpu.concatenate %180, %184 in 0 : vector<2x128xf32>, vector<2x128xf32> -> vector<4x128xf32>
    %186 = arith.negf %185 : vector<4x128xf32>
    %187 = math.exp %186 : vector<4x128xf32>
    %cst_48 = arith.constant 1.000000e+00 : f32
    %188 = vector.broadcast %cst_48 : f32 to vector<4x128xf32>
    %189 = arith.addf %188, %187 : vector<4x128xf32>
    %190 = arith.divf %188, %189 : vector<4x128xf32>
    %191 = math.tanh %185 : vector<4x128xf32>
    %192 = vector.extract_strided_slice %190 {offsets = [0, 0], sizes = [4, 32], strides = [1, 1]} : vector<4x128xf32> to vector<4x32xf32>
    %193 = vector.extract_strided_slice %190 {offsets = [0, 32], sizes = [4, 32], strides = [1, 1]} : vector<4x128xf32> to vector<4x32xf32>
    %194 = vector.extract_strided_slice %191 {offsets = [0, 64], sizes = [4, 32], strides = [1, 1]} : vector<4x128xf32> to vector<4x32xf32>
    %195 = vector.extract_strided_slice %190 {offsets = [0, 96], sizes = [4, 32], strides = [1, 1]} : vector<4x128xf32> to vector<4x32xf32>
    %196 = arith.mulf %193, %174 : vector<4x32xf32>
    %197 = arith.mulf %192, %194 : vector<4x32xf32>
    %198 = arith.addf %196, %197 : vector<4x32xf32>
    %199 = math.tanh %198 : vector<4x32xf32>
    %200 = arith.mulf %195, %199 : vector<4x32xf32>
    %201 = vector.extract_strided_slice %23 {offsets = [14, 0], sizes = [2, 128], strides = [1, 1]} : vector<16x128xf32> to vector<2x128xf32>
    %202 = vector.extract_strided_slice %200 {offsets = [0, 0], sizes = [2, 32], strides = [1, 1]} : vector<4x32xf32> to vector<2x32xf32>
    %cst_49 = arith.constant dense<0.000000e+00> : vector<2x128xf32>
    %203 = tpu.matmul %202, %29, %cst_49 {dimension_numbers = #tpu.dot_dimension_numbers<[1], [0], [0], [1], [0, 0, 1, 1], [], []>} : vector<2x32xf32>, vector<32x128xf32>, vector<2x128xf32> -> vector<2x128xf32>
    %204 = arith.addf %201, %203 : vector<2x128xf32>
    %205 = vector.extract_strided_slice %28 {offsets = [0, 0], sizes = [2, 128], strides = [1, 1]} : vector<16x128xf32> to vector<2x128xf32>
    %206 = vector.extract_strided_slice %200 {offsets = [2, 0], sizes = [2, 32], strides = [1, 1]} : vector<4x32xf32> to vector<2x32xf32>
    %cst_50 = arith.constant dense<0.000000e+00> : vector<2x128xf32>
    %207 = tpu.matmul %206, %30, %cst_50 {dimension_numbers = #tpu.dot_dimension_numbers<[1], [0], [0], [1], [0, 0, 1, 1], [], []>} : vector<2x32xf32>, vector<32x128xf32>, vector<2x128xf32> -> vector<2x128xf32>
    %208 = arith.addf %205, %207 : vector<2x128xf32>
    %209 = tpu.concatenate %204, %208 in 0 : vector<2x128xf32>, vector<2x128xf32> -> vector<4x128xf32>
    %210 = arith.negf %209 : vector<4x128xf32>
    %211 = math.exp %210 : vector<4x128xf32>
    %cst_51 = arith.constant 1.000000e+00 : f32
    %212 = vector.broadcast %cst_51 : f32 to vector<4x128xf32>
    %213 = arith.addf %212, %211 : vector<4x128xf32>
    %214 = arith.divf %212, %213 : vector<4x128xf32>
    %215 = math.tanh %209 : vector<4x128xf32>
    %216 = vector.extract_strided_slice %214 {offsets = [0, 0], sizes = [4, 32], strides = [1, 1]} : vector<4x128xf32> to vector<4x32xf32>
    %217 = vector.extract_strided_slice %214 {offsets = [0, 32], sizes = [4, 32], strides = [1, 1]} : vector<4x128xf32> to vector<4x32xf32>
    %218 = vector.extract_strided_slice %215 {offsets = [0, 64], sizes = [4, 32], strides = [1, 1]} : vector<4x128xf32> to vector<4x32xf32>
    %219 = vector.extract_strided_slice %214 {offsets = [0, 96], sizes = [4, 32], strides = [1, 1]} : vector<4x128xf32> to vector<4x32xf32>
    %220 = arith.mulf %217, %198 : vector<4x32xf32>
    %221 = arith.mulf %216, %218 : vector<4x32xf32>
    %222 = arith.addf %220, %221 : vector<4x32xf32>
    %223 = math.tanh %222 : vector<4x32xf32>
    %224 = arith.mulf %219, %223 : vector<4x32xf32>
    %225 = vector.extract_strided_slice %224 {offsets = [0, 0], sizes = [2, 32], strides = [1, 1]} : vector<4x32xf32> to vector<2x32xf32>
    %226 = vector.extract_strided_slice %224 {offsets = [2, 0], sizes = [2, 32], strides = [1, 1]} : vector<4x32xf32> to vector<2x32xf32>
    %227 = tpu.concatenate %225, %226 in 1 : vector<2x32xf32>, vector<2x32xf32> -> vector<2x64xf32>
    %c0_52 = arith.constant 0 : index
    %c0_53 = arith.constant 0 : index
    %228 = vector.load %arg11[%c0_52, %c0_53] : memref<64x16xf32, #tpu.memory_space<vmem>>, vector<64x16xf32>
    %cst_54 = arith.constant dense<0.000000e+00> : vector<2x16xf32>
    %229 = tpu.matmul %227, %228, %cst_54 {dimension_numbers = #tpu.dot_dimension_numbers<[1], [0], [0], [1], [0, 0, 1, 1], [], []>} : vector<2x64xf32>, vector<64x16xf32>, vector<2x16xf32> -> vector<2x16xf32>
    %c0_55 = arith.constant 0 : index
    %c0_56 = arith.constant 0 : index
    %230 = vector.load %arg12[%c0_55, %c0_56] : memref<1x16xf32, #tpu.memory_space<vmem>>, vector<1x16xf32>
    %231 = vector.broadcast %230 : vector<1x16xf32> to vector<2x16xf32>
    %232 = arith.addf %229, %231 : vector<2x16xf32>
    %c0_57 = arith.constant 0 : index
    %c0_58 = arith.constant 0 : index
    %233 = vector.load %arg13[%c0_57, %c0_58] : memref<64x16xf32, #tpu.memory_space<vmem>>, vector<64x16xf32>
    %cst_59 = arith.constant dense<0.000000e+00> : vector<2x16xf32>
    %234 = tpu.matmul %227, %233, %cst_59 {dimension_numbers = #tpu.dot_dimension_numbers<[1], [0], [0], [1], [0, 0, 1, 1], [], []>} : vector<2x64xf32>, vector<64x16xf32>, vector<2x16xf32> -> vector<2x16xf32>
    %c0_60 = arith.constant 0 : index
    %c0_61 = arith.constant 0 : index
    %235 = vector.load %arg14[%c0_60, %c0_61] : memref<1x16xf32, #tpu.memory_space<vmem>>, vector<1x16xf32>
    %236 = vector.broadcast %235 : vector<1x16xf32> to vector<2x16xf32>
    %237 = arith.addf %234, %236 : vector<2x16xf32>
    %cst_62 = arith.constant 5.000000e-01 : f32
    %238 = vector.broadcast %cst_62 : f32 to vector<2x16xf32>
    %239 = arith.mulf %238, %237 : vector<2x16xf32>
    %240 = math.exp %239 : vector<2x16xf32>
    %c0_63 = arith.constant 0 : index
    %c0_64 = arith.constant 0 : index
    %241 = vector.load %arg3[%c0_63, %c0_64] : memref<2x16xf32, #tpu.memory_space<vmem>>, vector<2x16xf32>
    %242 = arith.mulf %241, %240 : vector<2x16xf32>
    %243 = arith.addf %242, %232 : vector<2x16xf32>
    %cst_65 = arith.constant 1.000000e+00 : f32
    %244 = vector.broadcast %cst_65 : f32 to vector<2x16xf32>
    %245 = arith.addf %244, %237 : vector<2x16xf32>
    %246 = arith.mulf %232, %232 : vector<2x16xf32>
    %247 = arith.subf %245, %246 : vector<2x16xf32>
    %248 = math.exp %237 : vector<2x16xf32>
    %249 = arith.subf %247, %248 : vector<2x16xf32>
    %cst_66 = arith.constant dense<0.000000e+00> : vector<2xf32>
    %250 = vector.multi_reduction <add>, %249, %cst_66 [1] : vector<2x16xf32> to vector<2xf32>
    %251 = vector.shape_cast %250 : vector<2xf32> to vector<2x1xf32>
    %cst_67 = arith.constant -5.000000e-01 : f32
    %252 = vector.broadcast %cst_67 : f32 to vector<2x1xf32>
    %253 = arith.mulf %252, %251 : vector<2x1xf32>
    %cst_68 = arith.constant dense<0.000000e+00> : vector<1xf32>
    %254 = vector.multi_reduction <add>, %253, %cst_68 [0] : vector<2x1xf32> to vector<1xf32>
    %255 = vector.shape_cast %254 : vector<1xf32> to vector<1x1xf32>
    %cst_69 = arith.constant 2.000000e+00 : f32
    %256 = vector.broadcast %cst_69 : f32 to vector<1x1xf32>
    %257 = arith.divf %255, %256 : vector<1x1xf32>
    %c0_70 = arith.constant 0 : index
    %c0_71 = arith.constant 0 : index
    %258 = vector.load %arg26[%c0_70, %c0_71] : memref<1x1xf32, #tpu.memory_space<vmem>>, vector<1x1xf32>
    tpu.vector_store %arg26[%c0_70, %c0_71], %257 {strides = array<i32>} : memref<1x1xf32, #tpu.memory_space<vmem>>, vector<1x1xf32>,
    %c0_72 = arith.constant 0 : index
    %c0_73 = arith.constant 0 : index
    %259 = vector.load %arg15[%c0_72, %c0_73] : memref<16x64xf32, #tpu.memory_space<vmem>>, vector<16x64xf32>
    %cst_74 = arith.constant dense<0.000000e+00> : vector<2x64xf32>
    %260 = tpu.matmul %243, %259, %cst_74 {dimension_numbers = #tpu.dot_dimension_numbers<[1], [0], [0], [1], [0, 0, 1, 1], [], []>} : vector<2x16xf32>, vector<16x64xf32>, vector<2x64xf32> -> vector<2x64xf32>
    %c0_75 = arith.constant 0 : index
    %c0_76 = arith.constant 0 : index
    %261 = vector.load %arg16[%c0_75, %c0_76] : memref<1x64xf32, #tpu.memory_space<vmem>>, vector<1x64xf32>
    %262 = vector.broadcast %261 : vector<1x64xf32> to vector<2x64xf32>
    %263 = arith.addf %260, %262 : vector<2x64xf32>
    %cst_77 = arith.constant 0.000000e+00 : f32
    %264 = vector.broadcast %cst_77 : f32 to vector<2x64xf32>
    %265 = arith.maximumf %263, %264 : vector<2x64xf32>
    %266 = vector.extract_strided_slice %265 {offsets = [0, 0], sizes = [1, 32], strides = [1, 1]} : vector<2x64xf32> to vector<1x32xf32>
    %267 = vector.extract_strided_slice %265 {offsets = [0, 32], sizes = [1, 32], strides = [1, 1]} : vector<2x64xf32> to vector<1x32xf32>
    %268 = tpu.concatenate %266, %267 in 0 : vector<1x32xf32>, vector<1x32xf32> -> vector<2x32xf32>
    %269 = vector.extract_strided_slice %265 {offsets = [1, 0], sizes = [1, 32], strides = [1, 1]} : vector<2x64xf32> to vector<1x32xf32>
    %270 = vector.extract_strided_slice %265 {offsets = [1, 32], sizes = [1, 32], strides = [1, 1]} : vector<2x64xf32> to vector<1x32xf32>
    %271 = tpu.concatenate %269, %270 in 0 : vector<1x32xf32>, vector<1x32xf32> -> vector<2x32xf32>
    %c0_78 = arith.constant 0 : index
    %c0_79 = arith.constant 0 : index
    %272 = vector.load %arg17[%c0_78, %c0_79] : memref<32x128xf32, #tpu.memory_space<vmem>>, vector<32x128xf32>
    %cst_80 = arith.constant dense<0.000000e+00> : vector<20x128xf32>
    %273 = tpu.matmul %18, %272, %cst_80 {dimension_numbers = #tpu.dot_dimension_numbers<[1], [0], [0], [1], [0, 0, 1, 1], [], []>} : vector<20x32xf32>, vector<32x128xf32>, vector<20x128xf32> -> vector<20x128xf32>
    %c0_81 = arith.constant 0 : index
    %c0_82 = arith.constant 0 : index
    %274 = vector.load %arg20[%c0_81, %c0_82] : memref<1x128xf32, #tpu.memory_space<vmem>>, vector<1x128xf32>
    %275 = vector.broadcast %274 : vector<1x128xf32> to vector<20x128xf32>
    %276 = arith.addf %273, %275 : vector<20x128xf32>
    %c0_83 = arith.constant 0 : index
    %c0_84 = arith.constant 0 : index
    %277 = vector.load %arg18[%c0_83, %c0_84] : memref<16x128xf32, #tpu.memory_space<vmem>>, vector<16x128xf32>
    %cst_85 = arith.constant dense<0.000000e+00> : vector<2x128xf32>
    %278 = tpu.matmul %243, %277, %cst_85 {dimension_numbers = #tpu.dot_dimension_numbers<[1], [0], [0], [1], [0, 0, 1, 1], [], []>} : vector<2x16xf32>, vector<16x128xf32>, vector<2x128xf32> -> vector<2x128xf32>
    %c0_86 = arith.constant 0 : index
    %c0_87 = arith.constant 0 : index
    %279 = vector.load %arg19[%c0_86, %c0_87] : memref<32x128xf32, #tpu.memory_space<vmem>>, vector<32x128xf32>
    %280 = vector.extract_strided_slice %276 {offsets = [0, 0], sizes = [2, 128], strides = [1, 1]} : vector<20x128xf32> to vector<2x128xf32>
    %281 = arith.addf %280, %278 : vector<2x128xf32>
    %cst_88 = arith.constant dense<0.000000e+00> : vector<2x128xf32>
    %282 = tpu.matmul %268, %279, %cst_88 {dimension_numbers = #tpu.dot_dimension_numbers<[1], [0], [0], [1], [0, 0, 1, 1], [], []>} : vector<2x32xf32>, vector<32x128xf32>, vector<2x128xf32> -> vector<2x128xf32>
    %283 = arith.addf %281, %282 : vector<2x128xf32>
    %284 = arith.negf %283 : vector<2x128xf32>
    %285 = math.exp %284 : vector<2x128xf32>
    %cst_89 = arith.constant 1.000000e+00 : f32
    %286 = vector.broadcast %cst_89 : f32 to vector<2x128xf32>
    %287 = arith.addf %286, %285 : vector<2x128xf32>
    %288 = arith.divf %286, %287 : vector<2x128xf32>
    %289 = math.tanh %283 : vector<2x128xf32>
    %290 = vector.extract_strided_slice %288 {offsets = [0, 0], sizes = [2, 32], strides = [1, 1]} : vector<2x128xf32> to vector<2x32xf32>
    %291 = vector.extract_strided_slice %288 {offsets = [0, 32], sizes = [2, 32], strides = [1, 1]} : vector<2x128xf32> to vector<2x32xf32>
    %292 = vector.extract_strided_slice %289 {offsets = [0, 64], sizes = [2, 32], strides = [1, 1]} : vector<2x128xf32> to vector<2x32xf32>
    %293 = vector.extract_strided_slice %288 {offsets = [0, 96], sizes = [2, 32], strides = [1, 1]} : vector<2x128xf32> to vector<2x32xf32>
    %294 = arith.mulf %291, %271 : vector<2x32xf32>
    %295 = arith.mulf %290, %292 : vector<2x32xf32>
    %296 = arith.addf %294, %295 : vector<2x32xf32>
    %297 = math.tanh %296 : vector<2x32xf32>
    %298 = arith.mulf %293, %297 : vector<2x32xf32>
    %299 = vector.extract_strided_slice %276 {offsets = [2, 0], sizes = [2, 128], strides = [1, 1]} : vector<20x128xf32> to vector<2x128xf32>
    %300 = arith.addf %299, %278 : vector<2x128xf32>
    %cst_90 = arith.constant dense<0.000000e+00> : vector<2x128xf32>
    %301 = tpu.matmul %298, %279, %cst_90 {dimension_numbers = #tpu.dot_dimension_numbers<[1], [0], [0], [1], [0, 0, 1, 1], [], []>} : vector<2x32xf32>, vector<32x128xf32>, vector<2x128xf32> -> vector<2x128xf32>
    %302 = arith.addf %300, %301 : vector<2x128xf32>
    %303 = arith.negf %302 : vector<2x128xf32>
    %304 = math.exp %303 : vector<2x128xf32>
    %cst_91 = arith.constant 1.000000e+00 : f32
    %305 = vector.broadcast %cst_91 : f32 to vector<2x128xf32>
    %306 = arith.addf %305, %304 : vector<2x128xf32>
    %307 = arith.divf %305, %306 : vector<2x128xf32>
    %308 = math.tanh %302 : vector<2x128xf32>
    %309 = vector.extract_strided_slice %307 {offsets = [0, 0], sizes = [2, 32], strides = [1, 1]} : vector<2x128xf32> to vector<2x32xf32>
    %310 = vector.extract_strided_slice %307 {offsets = [0, 32], sizes = [2, 32], strides = [1, 1]} : vector<2x128xf32> to vector<2x32xf32>
    %311 = vector.extract_strided_slice %308 {offsets = [0, 64], sizes = [2, 32], strides = [1, 1]} : vector<2x128xf32> to vector<2x32xf32>
    %312 = vector.extract_strided_slice %307 {offsets = [0, 96], sizes = [2, 32], strides = [1, 1]} : vector<2x128xf32> to vector<2x32xf32>
    %313 = arith.mulf %310, %296 : vector<2x32xf32>
    %314 = arith.mulf %309, %311 : vector<2x32xf32>
    %315 = arith.addf %313, %314 : vector<2x32xf32>
    %316 = math.tanh %315 : vector<2x32xf32>
    %317 = arith.mulf %312, %316 : vector<2x32xf32>
    %318 = vector.extract_strided_slice %276 {offsets = [4, 0], sizes = [2, 128], strides = [1, 1]} : vector<20x128xf32> to vector<2x128xf32>
    %319 = arith.addf %318, %278 : vector<2x128xf32>
    %cst_92 = arith.constant dense<0.000000e+00> : vector<2x128xf32>
    %320 = tpu.matmul %317, %279, %cst_92 {dimension_numbers = #tpu.dot_dimension_numbers<[1], [0], [0], [1], [0, 0, 1, 1], [], []>} : vector<2x32xf32>, vector<32x128xf32>, vector<2x128xf32> -> vector<2x128xf32>
    %321 = arith.addf %319, %320 : vector<2x128xf32>
    %322 = arith.negf %321 : vector<2x128xf32>
    %323 = math.exp %322 : vector<2x128xf32>
    %cst_93 = arith.constant 1.000000e+00 : f32
    %324 = vector.broadcast %cst_93 : f32 to vector<2x128xf32>
    %325 = arith.addf %324, %323 : vector<2x128xf32>
    %326 = arith.divf %324, %325 : vector<2x128xf32>
    %327 = math.tanh %321 : vector<2x128xf32>
    %328 = vector.extract_strided_slice %326 {offsets = [0, 0], sizes = [2, 32], strides = [1, 1]} : vector<2x128xf32> to vector<2x32xf32>
    %329 = vector.extract_strided_slice %326 {offsets = [0, 32], sizes = [2, 32], strides = [1, 1]} : vector<2x128xf32> to vector<2x32xf32>
    %330 = vector.extract_strided_slice %327 {offsets = [0, 64], sizes = [2, 32], strides = [1, 1]} : vector<2x128xf32> to vector<2x32xf32>
    %331 = vector.extract_strided_slice %326 {offsets = [0, 96], sizes = [2, 32], strides = [1, 1]} : vector<2x128xf32> to vector<2x32xf32>
    %332 = arith.mulf %329, %315 : vector<2x32xf32>
    %333 = arith.mulf %328, %330 : vector<2x32xf32>
    %334 = arith.addf %332, %333 : vector<2x32xf32>
    %335 = math.tanh %334 : vector<2x32xf32>
    %336 = arith.mulf %331, %335 : vector<2x32xf32>
    %337 = vector.extract_strided_slice %276 {offsets = [6, 0], sizes = [2, 128], strides = [1, 1]} : vector<20x128xf32> to vector<2x128xf32>
    %338 = arith.addf %337, %278 : vector<2x128xf32>
    %cst_94 = arith.constant dense<0.000000e+00> : vector<2x128xf32>
    %339 = tpu.matmul %336, %279, %cst_94 {dimension_numbers = #tpu.dot_dimension_numbers<[1], [0], [0], [1], [0, 0, 1, 1], [], []>} : vector<2x32xf32>, vector<32x128xf32>, vector<2x128xf32> -> vector<2x128xf32>
    %340 = arith.addf %338, %339 : vector<2x128xf32>
    %341 = arith.negf %340 : vector<2x128xf32>
    %342 = math.exp %341 : vector<2x128xf32>
    %cst_95 = arith.constant 1.000000e+00 : f32
    %343 = vector.broadcast %cst_95 : f32 to vector<2x128xf32>
    %344 = arith.addf %343, %342 : vector<2x128xf32>
    %345 = arith.divf %343, %344 : vector<2x128xf32>
    %346 = math.tanh %340 : vector<2x128xf32>
    %347 = vector.extract_strided_slice %345 {offsets = [0, 0], sizes = [2, 32], strides = [1, 1]} : vector<2x128xf32> to vector<2x32xf32>
    %348 = vector.extract_strided_slice %345 {offsets = [0, 32], sizes = [2, 32], strides = [1, 1]} : vector<2x128xf32> to vector<2x32xf32>
    %349 = vector.extract_strided_slice %346 {offsets = [0, 64], sizes = [2, 32], strides = [1, 1]} : vector<2x128xf32> to vector<2x32xf32>
    %350 = vector.extract_strided_slice %345 {offsets = [0, 96], sizes = [2, 32], strides = [1, 1]} : vector<2x128xf32> to vector<2x32xf32>
    %351 = arith.mulf %348, %334 : vector<2x32xf32>
    %352 = arith.mulf %347, %349 : vector<2x32xf32>
    %353 = arith.addf %351, %352 : vector<2x32xf32>
    %354 = math.tanh %353 : vector<2x32xf32>
    %355 = arith.mulf %350, %354 : vector<2x32xf32>
    %356 = vector.extract_strided_slice %276 {offsets = [8, 0], sizes = [2, 128], strides = [1, 1]} : vector<20x128xf32> to vector<2x128xf32>
    %357 = arith.addf %356, %278 : vector<2x128xf32>
    %cst_96 = arith.constant dense<0.000000e+00> : vector<2x128xf32>
    %358 = tpu.matmul %355, %279, %cst_96 {dimension_numbers = #tpu.dot_dimension_numbers<[1], [0], [0], [1], [0, 0, 1, 1], [], []>} : vector<2x32xf32>, vector<32x128xf32>, vector<2x128xf32> -> vector<2x128xf32>
    %359 = arith.addf %357, %358 : vector<2x128xf32>
    %360 = arith.negf %359 : vector<2x128xf32>
    %361 = math.exp %360 : vector<2x128xf32>
    %cst_97 = arith.constant 1.000000e+00 : f32
    %362 = vector.broadcast %cst_97 : f32 to vector<2x128xf32>
    %363 = arith.addf %362, %361 : vector<2x128xf32>
    %364 = arith.divf %362, %363 : vector<2x128xf32>
    %365 = math.tanh %359 : vector<2x128xf32>
    %366 = vector.extract_strided_slice %364 {offsets = [0, 0], sizes = [2, 32], strides = [1, 1]} : vector<2x128xf32> to vector<2x32xf32>
    %367 = vector.extract_strided_slice %364 {offsets = [0, 32], sizes = [2, 32], strides = [1, 1]} : vector<2x128xf32> to vector<2x32xf32>
    %368 = vector.extract_strided_slice %365 {offsets = [0, 64], sizes = [2, 32], strides = [1, 1]} : vector<2x128xf32> to vector<2x32xf32>
    %369 = vector.extract_strided_slice %364 {offsets = [0, 96], sizes = [2, 32], strides = [1, 1]} : vector<2x128xf32> to vector<2x32xf32>
    %370 = arith.mulf %367, %353 : vector<2x32xf32>
    %371 = arith.mulf %366, %368 : vector<2x32xf32>
    %372 = arith.addf %370, %371 : vector<2x32xf32>
    %373 = math.tanh %372 : vector<2x32xf32>
    %374 = arith.mulf %369, %373 : vector<2x32xf32>
    %375 = vector.extract_strided_slice %276 {offsets = [10, 0], sizes = [2, 128], strides = [1, 1]} : vector<20x128xf32> to vector<2x128xf32>
    %376 = arith.addf %375, %278 : vector<2x128xf32>
    %cst_98 = arith.constant dense<0.000000e+00> : vector<2x128xf32>
    %377 = tpu.matmul %374, %279, %cst_98 {dimension_numbers = #tpu.dot_dimension_numbers<[1], [0], [0], [1], [0, 0, 1, 1], [], []>} : vector<2x32xf32>, vector<32x128xf32>, vector<2x128xf32> -> vector<2x128xf32>
    %378 = arith.addf %376, %377 : vector<2x128xf32>
    %379 = arith.negf %378 : vector<2x128xf32>
    %380 = math.exp %379 : vector<2x128xf32>
    %cst_99 = arith.constant 1.000000e+00 : f32
    %381 = vector.broadcast %cst_99 : f32 to vector<2x128xf32>
    %382 = arith.addf %381, %380 : vector<2x128xf32>
    %383 = arith.divf %381, %382 : vector<2x128xf32>
    %384 = math.tanh %378 : vector<2x128xf32>
    %385 = vector.extract_strided_slice %383 {offsets = [0, 0], sizes = [2, 32], strides = [1, 1]} : vector<2x128xf32> to vector<2x32xf32>
    %386 = vector.extract_strided_slice %383 {offsets = [0, 32], sizes = [2, 32], strides = [1, 1]} : vector<2x128xf32> to vector<2x32xf32>
    %387 = vector.extract_strided_slice %384 {offsets = [0, 64], sizes = [2, 32], strides = [1, 1]} : vector<2x128xf32> to vector<2x32xf32>
    %388 = vector.extract_strided_slice %383 {offsets = [0, 96], sizes = [2, 32], strides = [1, 1]} : vector<2x128xf32> to vector<2x32xf32>
    %389 = arith.mulf %386, %372 : vector<2x32xf32>
    %390 = arith.mulf %385, %387 : vector<2x32xf32>
    %391 = arith.addf %389, %390 : vector<2x32xf32>
    %392 = math.tanh %391 : vector<2x32xf32>
    %393 = arith.mulf %388, %392 : vector<2x32xf32>
    %394 = vector.extract_strided_slice %276 {offsets = [12, 0], sizes = [2, 128], strides = [1, 1]} : vector<20x128xf32> to vector<2x128xf32>
    %395 = arith.addf %394, %278 : vector<2x128xf32>
    %cst_100 = arith.constant dense<0.000000e+00> : vector<2x128xf32>
    %396 = tpu.matmul %393, %279, %cst_100 {dimension_numbers = #tpu.dot_dimension_numbers<[1], [0], [0], [1], [0, 0, 1, 1], [], []>} : vector<2x32xf32>, vector<32x128xf32>, vector<2x128xf32> -> vector<2x128xf32>
    %397 = arith.addf %395, %396 : vector<2x128xf32>
    %398 = arith.negf %397 : vector<2x128xf32>
    %399 = math.exp %398 : vector<2x128xf32>
    %cst_101 = arith.constant 1.000000e+00 : f32
    %400 = vector.broadcast %cst_101 : f32 to vector<2x128xf32>
    %401 = arith.addf %400, %399 : vector<2x128xf32>
    %402 = arith.divf %400, %401 : vector<2x128xf32>
    %403 = math.tanh %397 : vector<2x128xf32>
    %404 = vector.extract_strided_slice %402 {offsets = [0, 0], sizes = [2, 32], strides = [1, 1]} : vector<2x128xf32> to vector<2x32xf32>
    %405 = vector.extract_strided_slice %402 {offsets = [0, 32], sizes = [2, 32], strides = [1, 1]} : vector<2x128xf32> to vector<2x32xf32>
    %406 = vector.extract_strided_slice %403 {offsets = [0, 64], sizes = [2, 32], strides = [1, 1]} : vector<2x128xf32> to vector<2x32xf32>
    %407 = vector.extract_strided_slice %402 {offsets = [0, 96], sizes = [2, 32], strides = [1, 1]} : vector<2x128xf32> to vector<2x32xf32>
    %408 = arith.mulf %405, %391 : vector<2x32xf32>
    %409 = arith.mulf %404, %406 : vector<2x32xf32>
    %410 = arith.addf %408, %409 : vector<2x32xf32>
    %411 = math.tanh %410 : vector<2x32xf32>
    %412 = arith.mulf %407, %411 : vector<2x32xf32>
    %413 = vector.extract_strided_slice %276 {offsets = [14, 0], sizes = [2, 128], strides = [1, 1]} : vector<20x128xf32> to vector<2x128xf32>
    %414 = arith.addf %413, %278 : vector<2x128xf32>
    %cst_102 = arith.constant dense<0.000000e+00> : vector<2x128xf32>
    %415 = tpu.matmul %412, %279, %cst_102 {dimension_numbers = #tpu.dot_dimension_numbers<[1], [0], [0], [1], [0, 0, 1, 1], [], []>} : vector<2x32xf32>, vector<32x128xf32>, vector<2x128xf32> -> vector<2x128xf32>
    %416 = arith.addf %414, %415 : vector<2x128xf32>
    %417 = arith.negf %416 : vector<2x128xf32>
    %418 = math.exp %417 : vector<2x128xf32>
    %cst_103 = arith.constant 1.000000e+00 : f32
    %419 = vector.broadcast %cst_103 : f32 to vector<2x128xf32>
    %420 = arith.addf %419, %418 : vector<2x128xf32>
    %421 = arith.divf %419, %420 : vector<2x128xf32>
    %422 = math.tanh %416 : vector<2x128xf32>
    %423 = vector.extract_strided_slice %421 {offsets = [0, 0], sizes = [2, 32], strides = [1, 1]} : vector<2x128xf32> to vector<2x32xf32>
    %424 = vector.extract_strided_slice %421 {offsets = [0, 32], sizes = [2, 32], strides = [1, 1]} : vector<2x128xf32> to vector<2x32xf32>
    %425 = vector.extract_strided_slice %422 {offsets = [0, 64], sizes = [2, 32], strides = [1, 1]} : vector<2x128xf32> to vector<2x32xf32>
    %426 = vector.extract_strided_slice %421 {offsets = [0, 96], sizes = [2, 32], strides = [1, 1]} : vector<2x128xf32> to vector<2x32xf32>
    %427 = arith.mulf %424, %410 : vector<2x32xf32>
    %428 = arith.mulf %423, %425 : vector<2x32xf32>
    %429 = arith.addf %427, %428 : vector<2x32xf32>
    %430 = math.tanh %429 : vector<2x32xf32>
    %431 = arith.mulf %426, %430 : vector<2x32xf32>
    %432 = vector.extract_strided_slice %276 {offsets = [16, 0], sizes = [2, 128], strides = [1, 1]} : vector<20x128xf32> to vector<2x128xf32>
    %433 = arith.addf %432, %278 : vector<2x128xf32>
    %cst_104 = arith.constant dense<0.000000e+00> : vector<2x128xf32>
    %434 = tpu.matmul %431, %279, %cst_104 {dimension_numbers = #tpu.dot_dimension_numbers<[1], [0], [0], [1], [0, 0, 1, 1], [], []>} : vector<2x32xf32>, vector<32x128xf32>, vector<2x128xf32> -> vector<2x128xf32>
    %435 = arith.addf %433, %434 : vector<2x128xf32>
    %436 = arith.negf %435 : vector<2x128xf32>
    %437 = math.exp %436 : vector<2x128xf32>
    %cst_105 = arith.constant 1.000000e+00 : f32
    %438 = vector.broadcast %cst_105 : f32 to vector<2x128xf32>
    %439 = arith.addf %438, %437 : vector<2x128xf32>
    %440 = arith.divf %438, %439 : vector<2x128xf32>
    %441 = math.tanh %435 : vector<2x128xf32>
    %442 = vector.extract_strided_slice %440 {offsets = [0, 0], sizes = [2, 32], strides = [1, 1]} : vector<2x128xf32> to vector<2x32xf32>
    %443 = vector.extract_strided_slice %440 {offsets = [0, 32], sizes = [2, 32], strides = [1, 1]} : vector<2x128xf32> to vector<2x32xf32>
    %444 = vector.extract_strided_slice %441 {offsets = [0, 64], sizes = [2, 32], strides = [1, 1]} : vector<2x128xf32> to vector<2x32xf32>
    %445 = vector.extract_strided_slice %440 {offsets = [0, 96], sizes = [2, 32], strides = [1, 1]} : vector<2x128xf32> to vector<2x32xf32>
    %446 = arith.mulf %443, %429 : vector<2x32xf32>
    %447 = arith.mulf %442, %444 : vector<2x32xf32>
    %448 = arith.addf %446, %447 : vector<2x32xf32>
    %449 = math.tanh %448 : vector<2x32xf32>
    %450 = arith.mulf %445, %449 : vector<2x32xf32>
    %451 = vector.extract_strided_slice %276 {offsets = [18, 0], sizes = [2, 128], strides = [1, 1]} : vector<20x128xf32> to vector<2x128xf32>
    %452 = arith.addf %451, %278 : vector<2x128xf32>
    %cst_106 = arith.constant dense<0.000000e+00> : vector<2x128xf32>
    %453 = tpu.matmul %450, %279, %cst_106 {dimension_numbers = #tpu.dot_dimension_numbers<[1], [0], [0], [1], [0, 0, 1, 1], [], []>} : vector<2x32xf32>, vector<32x128xf32>, vector<2x128xf32> -> vector<2x128xf32>
    %454 = arith.addf %452, %453 : vector<2x128xf32>
    %455 = arith.negf %454 : vector<2x128xf32>
    %456 = math.exp %455 : vector<2x128xf32>
    %cst_107 = arith.constant 1.000000e+00 : f32
    %457 = vector.broadcast %cst_107 : f32 to vector<2x128xf32>
    %458 = arith.addf %457, %456 : vector<2x128xf32>
    %459 = arith.divf %457, %458 : vector<2x128xf32>
    %460 = math.tanh %454 : vector<2x128xf32>
    %461 = vector.extract_strided_slice %459 {offsets = [0, 0], sizes = [2, 32], strides = [1, 1]} : vector<2x128xf32> to vector<2x32xf32>
    %462 = vector.extract_strided_slice %459 {offsets = [0, 32], sizes = [2, 32], strides = [1, 1]} : vector<2x128xf32> to vector<2x32xf32>
    %463 = vector.extract_strided_slice %460 {offsets = [0, 64], sizes = [2, 32], strides = [1, 1]} : vector<2x128xf32> to vector<2x32xf32>
    %464 = vector.extract_strided_slice %459 {offsets = [0, 96], sizes = [2, 32], strides = [1, 1]} : vector<2x128xf32> to vector<2x32xf32>
    %465 = arith.mulf %462, %448 : vector<2x32xf32>
    %466 = arith.mulf %461, %463 : vector<2x32xf32>
    %467 = arith.addf %465, %466 : vector<2x32xf32>
    %468 = math.tanh %467 : vector<2x32xf32>
    %469 = arith.mulf %464, %468 : vector<2x32xf32>
    %c0_108 = arith.constant 0 : index
    %c0_109 = arith.constant 0 : index
    %470 = vector.load %arg24[%c0_108, %c0_109] : memref<2x32xf32, #tpu.memory_space<vmem>>, vector<2x32xf32>
    tpu.vector_store %arg24[%c0_108, %c0_109], %469 {strides = array<i32>} : memref<2x32xf32, #tpu.memory_space<vmem>>, vector<2x32xf32>,
    %c0_110 = arith.constant 0 : index
    %c0_111 = arith.constant 0 : index
    %471 = vector.load %arg25[%c0_110, %c0_111] : memref<2x32xf32, #tpu.memory_space<vmem>>, vector<2x32xf32>
    tpu.vector_store %arg25[%c0_110, %c0_111], %467 {strides = array<i32>} : memref<2x32xf32, #tpu.memory_space<vmem>>, vector<2x32xf32>,
    %472 = tpu.concatenate %298, %317, %336, %355, %374, %393, %412, %431, %450, %469 in 0 : vector<2x32xf32>, vector<2x32xf32>, vector<2x32xf32>, vector<2x32xf32>, vector<2x32xf32>, vector<2x32xf32>, vector<2x32xf32>, vector<2x32xf32>, vector<2x32xf32>, vector<2x32xf32> -> vector<20x32xf32>
    %c0_112 = arith.constant 0 : index
    %c0_113 = arith.constant 0 : index
    %473 = vector.load %arg21[%c0_112, %c0_113] : memref<32x64xf32, #tpu.memory_space<vmem>>, vector<32x64xf32>
    %cst_114 = arith.constant dense<0.000000e+00> : vector<20x64xf32>
    %474 = tpu.matmul %472, %473, %cst_114 {dimension_numbers = #tpu.dot_dimension_numbers<[1], [0], [0], [1], [0, 0, 1, 1], [], []>} : vector<20x32xf32>, vector<32x64xf32>, vector<20x64xf32> -> vector<20x64xf32>
    %c0_115 = arith.constant 0 : index
    %c0_116 = arith.constant 0 : index
    %475 = vector.load %arg22[%c0_115, %c0_116] : memref<1x64xf32, #tpu.memory_space<vmem>>, vector<1x64xf32>
    %476 = vector.broadcast %475 : vector<1x64xf32> to vector<20x64xf32>
    %477 = arith.addf %474, %476 : vector<20x64xf32>
    %c0_117 = arith.constant 0 : index
    %c0_118 = arith.constant 0 : index
    %478 = vector.load %arg23[%c0_117, %c0_118] : memref<20x64xf32, #tpu.memory_space<vmem>>, vector<20x64xf32>
    tpu.vector_store %arg23[%c0_117, %c0_118], %477 {strides = array<i32>} : memref<20x64xf32, #tpu.memory_space<vmem>>, vector<20x64xf32>,
    return
  }
}

</mosaic_0001>

<bundles_post_ra>
// kernel: rvae_forward.1
= control target key start
LH: loop header
LB: loop body
LE: loop exit
PB: predicated region body
PF: predicated region fallthrough
CT: control target
= control target key end

     0   :  { %s5730_s0 = inlined_call_operand.vmem [shape: s32[16,1], index: 0, kind: input, shape index: {}]   ;;  %s5731_s1 = inlined_call_operand.vmem [shape: s32[20,1], index: 1, kind: input, shape index: {}]   ;;  %s5732_s2 = inlined_call_operand.vmem [shape: f32[20,32], index: 2, kind: input, shape index: {}]   ;;  %s5733_s3 = inlined_call_operand.vmem [shape: f32[2,16], index: 3, kind: input, shape index: {}]   ;;  %s5734_s4 = inlined_call_operand.vmem [shape: f32[64,32], index: 4, kind: input, shape index: {}]   ;;  %s5735_s5 = inlined_call_operand.vmem [shape: f32[32,128], index: 5, kind: input, shape index: {}]   ;;  %s5736_s6 = inlined_call_operand.vmem [shape: f32[32,128], index: 6, kind: input, shape index: {}]   ;;  %s5737_s7 = inlined_call_operand.vmem [shape: f32[1,128], index: 7, kind: input, shape index: {}]   ;;  %s5738_s8 = inlined_call_operand.vmem [shape: f32[32,128], index: 8, kind: input, shape index: {}]   ;;  %s5739_s9 = inlined_call_operand.vmem [shape: f32[32,128], index: 9, kind: input, shape index: {}]   ;;  %s5740_s10 = inlined_call_operand.vmem [shape: f32[1,128], index: 10, kind: input, shape index: {}]   ;;  %s5741_s11 = inlined_call_operand.vmem [shape: f32[64,16], index: 11, kind: input, shape index: {}]   ;;  %s5742_s12 = inlined_call_operand.vmem [shape: f32[1,16], index: 12, kind: input, shape index: {}]   ;;  %s5743_s13 = inlined_call_operand.vmem [shape: f32[64,16], index: 13, kind: input, shape index: {}]   ;;  %s5744_s14 = inlined_call_operand.vmem [shape: f32[1,16], index: 14, kind: input, shape index: {}]   ;;  %s5745_s15 = inlined_call_operand.vmem [shape: f32[16,64], index: 15, kind: input, shape index: {}]   ;;  %s5746_s16 = inlined_call_operand.vmem [shape: f32[1,64], index: 16, kind: input, shape index: {}]   ;;  %s5747_s17 = inlined_call_operand.vmem [shape: f32[32,128], index: 17, kind: input, shape index: {}]   ;;  %s5748_s18 = inlined_call_operand.vmem [shape: f32[16,128], index: 18, kind: input, shape index: {}]   ;;  %s5749_s19 = inlined_call_operand.vmem [shape: f32[32,128], index: 19, kind: input, shape index: {}]   ;;  %s5750_s20 = inlined_call_operand.vmem [shape: f32[1,128], index: 20, kind: input, shape index: {}]   ;;  %s5751_s21 = inlined_call_operand.vmem [shape: f32[32,64], index: 21, kind: input, shape index: {}]   ;;  %s5752_s22 = inlined_call_operand.vmem [shape: f32[1,64], index: 22, kind: input, shape index: {}]   ;;  %s5753_s23 = inlined_call_operand.vmem [shape: f32[20,64], index: 23, kind: output, shape index: {0}]   ;;  %s5754_s24 = inlined_call_operand.hbm [shape: f32[2,32], index: 24, kind: output, shape index: {1}]   ;;  %s5755_s25 = inlined_call_operand.hbm [shape: f32[2,32], index: 25, kind: output, shape index: {2}]   ;;  %s5756_s26 = inlined_call_operand.hbm [shape: f32[1,1], index: 26, kind: output, shape index: {3}]  }
   0x1   :  { %5765 = sst [smem:[#allocation9_spill]] %s5730_s0 }
   0x2   :  { %5766 = sst [smem:[#allocation10_spill]] %s5731_s1 }
   0x3   :  { %5767 = sst [smem:[#allocation11_spill]] %s5732_s2 }
   0x4   :  { %5768 = sst [smem:[#allocation12_spill]] %s5733_s3 }
   0x5   :  { %5769 = sst [smem:[#allocation13_spill]] %s5734_s4 }
   0x6   :  { %5770 = sst [smem:[#allocation14_spill]] %s5735_s5 }
   0x7   :  { %5771 = sst [smem:[#allocation15_spill]] %s5736_s6 }
   0x8   :  { %5772 = sst [smem:[#allocation16_spill]] %s5737_s7 }
   0x9   :  { %5773 = sst [smem:[#allocation17_spill]] %s5738_s8 }
   0xa   :  { %5774 = sst [smem:[#allocation18_spill]] %s5739_s9 }
   0xb   :  { %5775 = sst [smem:[#allocation19_spill]] %s5740_s10 }
   0xc   :  { %32 = vsyncpa [#allocation3], 0  ;;  %s5776_s7 = sld [smem:[#allocation10_spill]]  ;;  %s5777_s4 = sld [smem:[#allocation9_spill]]  ;;  %v4876_v2 = vmov 0   ;;  %v4877_v9 = vmov 0.0|0.0  }
   0xd   :  { %4657 = vset.pattern.permute.xlu1 %v4876_v2  ;;  %4656 = vset.pattern.permute.xlu0 %v4876_v2  ;;  %s5778_s9 = sld [smem:[#allocation13_spill]]  ;;  %vm4878_vm0 = vmmov 0   ;;  %v4879_v11 = vmov 0.0  }
   0xe   :  { %4420 = vmatprep.subr.bf16.mxu1 %v4877_v9  ;;  %4001 = vmatprep.mubr.msk.f32.mxu1 %vm4878_vm0, %v4879_v11 }
  0x12   :  { %v184_v0 = vld [vmem:[%s5776_s7] sm:$0xff]  ;;  %v185_v7 = vld [vmem:[%s5776_s7 + $0x8] sm:$0xff] }
  0x13   :  { %v88_v1 = vld [vmem:[%s5777_s4] sm:$0xff]  ;;  %188 = vperm.xlu1 %4657, %v184_v0   ;;  %v81_v4 = vld [vmem:[%s5778_s9 + $0x8] sm:$0xff]  ;;  %v82_v5 = vld [vmem:[%s5778_s9 + $0x10] sm:$0xff] }
  0x14   :  { %v80_v3 = vld [vmem:[%s5778_s9] sm:$0xff]  ;;  %93 = vperm.xlu0 %4656, %v88_v1   ;;  %v83_v6 = vld [vmem:[%s5778_s9 + $0x18] sm:$0xff]  ;;  %v89_v8 = vld [vmem:[%s5777_s4 + $0x8] sm:$0xff] }
  0x15   :  { %v4404_v10 = vpack.c.bf16 %v81_v4, %v80_v3 }
  0x16   :  { %33 = vsyncpa [#allocation5], 0  ;;  %v4408_v12 = vpack.c.bf16 %v83_v6, %v82_v5  ;;  %v84_v13 = vld [vmem:[%s5778_s9 + $0x20] sm:$0xff]  ;;  %v85_v14 = vld [vmem:[%s5778_s9 + $0x28] sm:$0xff]  ;;  %s5779_s28 = sld [smem:[#allocation17_spill]]  ;;  %s5780_s30 = sld [smem:[#allocation14_spill]]  ;;  %v90_v26 = vlaneseq }
  0x17   :  { %4422 = vmatpush3.bf16.msra.mxu1 %v4404_v10  ;;  %4405 = vmatprep.subr.bf16.mxu0 %v4404_v10  ;;  %v186_v15 = vld [vmem:[%s5776_s7 + $0x10] sm:$0xf]  ;;  %v4412_v16 = vpack.c.bf16 %v85_v14, %v84_v13  ;;  %v87_v18 = vld [vmem:[%s5778_s9 + $0x38] sm:$0xff]  ;;  %vm102_vm1 = vcmask 523264   ;;  %s5781_s0 = sld [smem:[#allocation15_spill]]  ;;  %vm308_vm7 = vcmask 261120  }
  0x18   :  { %191 = vperm.xlu1 %4657, %v185_v7   ;;  %96 = vperm.xlu0 %4656, %v89_v8   ;;  %v86_v17 = vld [vmem:[%s5778_s9 + $0x30] sm:$0xff]  ;;  %v91_v27 = vand.u32 127, %v90_v26  ;;  %s5782_s9 = sld [smem:[#allocation18_spill]]  ;;  %s5783_s2 = sld [smem:[#allocation16_spill]]  ;;  %vm635_vm8 = vcmask 1041408   ;;  %vm2185_vm9 = vcmask 130048  }
  0x19   :  { %4423 = vmatprep.subr.bf16.mxu1 %v4877_v9  ;;  %4407 = vmatpush3.bf16.msra.mxu0 %v4404_v10  ;;  %v4416_v21 = vpack.c.bf16 %v87_v18, %v86_v17  ;;  %s5784_s10 = sld [smem:[#allocation19_spill]]  ;;  %s4880_s6 = smov 64   ;;  %vm2265_vm10 = vcmask 1040384   ;;  %vm3534_vm11 = vcmask 1043456   ;;  %vm3536_vm12 = vcmask 1045504  }
  0x1a   :  { %4409 = vmatprep.subr.bf16.mxu0 %v4408_v12  ;;  %s4881_s1 = smov 32   ;;  %s5785_s3 = sld [smem:[#allocation12_spill]]  ;;  %vm2160_vm13 = vcmask 123904   ;;  %vm2174_vm14 = vcmask 0   ;;  %vm3526_vm15 = vcmask 257026  }
  0x1b   :  { %4425 = vmatpush3.bf16.msra.mxu1 %v4408_v12  ;;  %s5786_s5 = sld [smem:[#allocation11_spill]]  ;;  %s4883_s27 = smov [#allocation4]  }
  0x1c   :  { %194 = vperm.xlu0 %4656, %v186_v15   ;;  %4426 = vmatprep.subr.bf16.mxu1 %v4877_v9  ;;  %v390_v19 = vld [vmem:[%s5779_s28] sm:$0xff]  ;;  %v391_v20 = vld [vmem:[%s5779_s28 + $0x8] sm:$0xff]  ;;  %v392_v28 = vld [vmem:[%s5779_s28 + $0x10] sm:$0xff] }
  0x1d   :  { %4411 = vmatpush3.bf16.msra.mxu0 %v4408_v12  ;;  %v297_v22 = vld [vmem:[%s5780_s30] sm:$0xff]  ;;  %v298_v23 = vld [vmem:[%s5780_s30 + $0x8] sm:$0xff]  ;;  %v4440_v24 = vpack.c.bf16 %v391_v20, %v390_v19  ;;  %v393_v29 = vld [vmem:[%s5779_s28 + $0x18] sm:$0xff] }
  0x1e   :  { %4413 = vmatprep.subr.bf16.mxu0 %v4412_v16  ;;  %v4432_v25 = vpack.c.bf16 %v298_v23, %v297_v22  ;;  %v4444_v32 = vpack.c.bf16 %v393_v29, %v392_v28  ;;  %v299_v35 = vld [vmem:[%s5780_s30 + $0x10] sm:$0xff]  ;;  %v300_v36 = vld [vmem:[%s5780_s30 + $0x18] sm:$0xff]  ;;  %v476_v45 = vld [vmem:[%s5781_s0] sm:$0xff] }
  0x1f   :  { %4428 = vmatpush3.bf16.msra.mxu1 %v4412_v16  ;;  %v4436_v39 = vpack.c.bf16 %v300_v36, %v299_v35  ;;  %v477_v47 = vld [vmem:[%s5781_s0 + $0x8] sm:$0xff]  ;;  %v480_v48 = vld [vmem:[%s5782_s9] sm:$0xff]  ;;  %v478_v54 = vld [vmem:[%s5781_s0 + $0x10] sm:$0xff] }
  0x20   :  { %4429 = vmatprep.subr.bf16.mxu1 %v4877_v9  ;;  %v481_v49 = vld [vmem:[%s5782_s9 + $0x8] sm:$0xff]  ;;  %v5122_v52 = vpack.c.bf16 %v477_v47, %v476_v45  ;;  %v479_v57 = vld [vmem:[%s5781_s0 + $0x18] sm:$0xff]  ;;  %v482_v58 = vld [vmem:[%s5782_s9 + $0x10] sm:$0xff] }
  0x21   :  { %4415 = vmatpush3.bf16.msra.mxu0 %v4412_v16  ;;  %v5124_v53 = vpack.c.bf16 %v481_v49, %v480_v48  ;;  %v483_v59 = vld [vmem:[%s5782_s9 + $0x18] sm:$0xff]  ;;  %v5146_v61 = vpack.c.bf16 %v479_v57, %v478_v54  ;;  %v3702_v0 = vld [vmem:[%s5783_s2] ss:$0 sm:$0xff] }
  0x22   :  { %4417 = vmatprep.subr.bf16.mxu0 %v4416_v21  ;;  %v5148_v62 = vpack.c.bf16 %v483_v59, %v482_v58  ;;  %v3705_v1 = vld [vmem:[%s5784_s10] ss:$0 sm:$0xff] }
  0x23   :  { %4431 = vmatpush3.bf16.msra.mxu1 %v4416_v21 }
  0x24   :  { %4441 = vmatprep.subr.bf16.mxu1 %v4440_v24 }
  0x25   :  { %4419 = vmatpush3.bf16.msra.mxu0 %v4416_v21 }
  0x26   :  { %4433 = vmatprep.subr.bf16.mxu0 %v4432_v25 }
  0x92   :  { %v189_v30 = vpop.permute.xlu1 %188 }
  0x93   :  { %v94_v31 = vpop.permute.xlu0 %93  ;;  %vm196_vm2 = vcmp.eq.s32.totalorder %v189_v30, %v91_v27 }
  0x94   :  { %vm98_vm3 = vcmp.eq.s32.totalorder %v94_v31, %v91_v27  ;;  %v199_v33 = vsel %vm196_vm2, 1.0, %v4879_v11 }
  0x95   :  { %v100_v34 = vsel %vm98_vm3, 1.0, %v4879_v11  ;;  %4002 = vmatmul.mubr.msk.f32.vlgmr.msra.gmra.mrb[0].mxu1 %vm102_vm1, %v199_v33 }
  0x96   :  { %3982 = vmatprep.mubr.msk.f32.mxu0 %vm102_vm1, %v100_v34  ;;  %4004 = vmatprep.mubr.msk.f32.mxu1 %vm4878_vm0, %v4879_v11 }
  0x97   :  { %v192_v37 = vpop.permute.xlu1 %191  ;;  %v97_v38 = vpop.permute.xlu0 %96  ;;  %4443 = vmatpush3.bf16.msra.mxu1 %v4440_v24 }
  0x98   :  { %vm197_vm4 = vcmp.eq.s32.totalorder %v192_v37, %v91_v27  ;;  %vm99_vm5 = vcmp.eq.s32.totalorder %v97_v38, %v91_v27  ;;  %4445 = vmatprep.subr.bf16.mxu1 %v4444_v32 }
  0x99   :  { %v200_v40 = vsel %vm197_vm4, 1.0, %v4879_v11  ;;  %v101_v41 = vsel %vm99_vm5, 1.0, %v4879_v11 }
  0x9a   :  { %3983 = vmatmul.mubr.msk.f32.vlgmr.msra.gmra.mrb[0].mxu0 %vm102_vm1, %v101_v41  ;;  %4005 = vmatmul.mubr.msk.f32.gmra.mrb[2].mxu1 %vm102_vm1, %v200_v40 }
  0x9b   :  { %v195_v42 = vpop.permute.xlu0 %194  ;;  %4007 = vmatprep.mubr.msk.f32.mxu1 %vm4878_vm0, %v4879_v11  ;;  %4435 = vmatpush3.bf16.msra.mxu0 %v4432_v25 }
  0x9c   :  { %vm198_vm6 = vcmp.eq.s32.totalorder %v195_v42, %v91_v27  ;;  %4447 = vmatpush3.bf16.msra.mxu1 %v4444_v32  ;;  %4437 = vmatprep.subr.bf16.mxu0 %v4436_v39 }
  0x9d   :  { %v201_v43 = vsel %vm198_vm6, 1.0, %v4879_v11  ;;  %4454 = vmatprep.subr.bf16.mxu1 %v4877_v9 }
  0x9e   :  { %4008 = vmatmul.mubr.msk.f32.gmra.mrb[4].mxu1 %vm102_vm1, %v201_v43 }
  0x9f   :  { %4439 = vmatpush3.bf16.msra.mxu0 %v4436_v39 }
  0xa0   :  { %4448 = vmatprep.subr.bf16.mxu0 %v4877_v9 }
 0x168   :  { %v5106_v44 = vpop.f32.mrb[0].mxu1 }
 0x169   :  { %v4003_v46 = vpop.f32.mrb[1].mxu1 }
 0x16d   :  { %v3984_v50 = vpop.f32.mrb[0].mxu0  ;;  %v5120_v51 = vpop.f32.mrb[2].mxu1 }
 0x16e   :  { %v175_v55 = vpop.f32.mrb[1].mxu0  ;;  %v4006_v56 = vpop.f32.mrb[3].mxu1 }
 0x16f   :  { %4018 = vmatprep.mubr.msk.f32.mxu0 %vm308_vm7, %v175_v55  ;;  %4029 = vmatprep.mubr.msk.f32.mxu1 %vm308_vm7, %v175_v55 }
 0x170   :  { %4019 = vmatmul.mubr.msk.f32.vlgmr.msra.gmra.mrb[2].mxu0 %vm308_vm7, %v3984_v50  ;;  %4030 = vmatmul.mubr.msk.f32.vlgmr.msra.gmra.mrb[6].mxu1 %vm308_vm7, %v3984_v50 }
 0x171   :  { %4450 = vmatpush3.bf16.msra.mxu0 %v5122_v52  ;;  %4456 = vmatpush3.bf16.msra.mxu1 %v5124_v53  ;;  %v5144_v60 = vpop.f32.mrb[4].mxu1 }
 0x172   :  { %v4009_v63 = vpop.f32.mrb[5].mxu1  ;;  %4451 = vmatprep.subr.bf16.mxu0 %v4877_v9  ;;  %4457 = vmatprep.subr.bf16.mxu1 %v4877_v9 }
 0x173   :  { %4040 = vmatprep.mubr.msk.f32.mxu0 %vm4878_vm0, %v4879_v11  ;;  %4051 = vmatprep.mubr.msk.f32.mxu1 %vm4878_vm0, %v4879_v11 }
 0x175   :  { %4453 = vmatpush3.bf16.msra.mxu0 %v5146_v61  ;;  %4459 = vmatpush3.bf16.msra.mxu1 %v5148_v62 }
 0x176   :  { %4460 = vmatprep.subr.bf16.mxu0 %v4877_v9  ;;  %4466 = vmatprep.subr.bf16.mxu1 %v4877_v9 }
 0x178   :  { %4041 = vmatmul.mubr.f32.vlgmr.msra.gmra.mrb[4].mxu0 %v4879_v11  ;;  %4052 = vmatmul.mubr.f32.vlgmr.msra.gmra.mrb[8].mxu1 %v4879_v11 }
 0x179   :  { %4462 = vmatpush3.bf16.msra.mxu0 %v5122_v52  ;;  %4468 = vmatpush3.bf16.msra.mxu1 %v5124_v53 }
 0x17a   :  { %4463 = vmatprep.subr.bf16.mxu0 %v4877_v9  ;;  %4469 = vmatprep.subr.bf16.mxu1 %v4877_v9 }
 0x17b   :  { %4062 = vmatprep.mubr.msk.f32.mxu0 %vm4878_vm0, %v4879_v11  ;;  %4073 = vmatprep.mubr.msk.f32.mxu1 %vm4878_vm0, %v4879_v11 }
 0x17d   :  { %4465 = vmatpush3.bf16.msra.mxu0 %v5146_v61  ;;  %4471 = vmatpush3.bf16.msra.mxu1 %v5148_v62 }
 0x17e   :  { %4472 = vmatprep.subr.bf16.mxu0 %v4877_v9  ;;  %4478 = vmatprep.subr.bf16.mxu1 %v4877_v9 }
 0x243   :  { %v4020_v2 = vpop.f32.mrb[2].mxu0  ;;  %v4031_v3 = vpop.f32.mrb[6].mxu1 }
 0x244   :  { %v5180_v4 = vadd.f32 %v4020_v2, %v3702_v0  ;;  %v381_v5 = vpop.f32.mrb[3].mxu0  ;;  %v467_v6 = vpop.f32.mrb[7].mxu1  ;;  %v5184_v12 = vadd.f32 %v4031_v3, %v3705_v1 }
 0x245   :  { %v5182_v7 = vadd.f32 %v3705_v1, %v467_v6  ;;  %v5186_v16 = vadd.f32 %v3702_v0, %v381_v5 }
 0x24b   :  { %v553_v8 = vpop.f32.mrb[4].mxu0  ;;  %v624_v10 = vpop.f32.mrb[8].mxu1 }
 0x24c   :  { %v629_v13 = vrot.slane %v624_v10, 2  ;;  %v4053_v14 = vpop.f32.mrb[9].mxu1  ;;  %v4042_v15 = vpop.f32.mrb[5].mxu0  ;;  %v557_v18 = vadd.f32 %v553_v8, %v5186_v16 }
 0x24e   :  { %v631_v17 = vadd.f32 %v629_v13, %v5184_v12 }
 0x250   :  { %v633_v19 = vrot.slane %v631_v17, 4 }
 0x252   :  { %v636_v20 = vsel %vm635_vm8, %v557_v18, %v633_v19 }
 0x253   :  { %4658 = vtanh.f32 %v636_v20  ;;  %v3708_v22 = vmul.f32 -1.442695, %v636_v20 }
 0x255   :  { %4660 = vpow2.f32 %v3708_v22 }
 0x25d   :  { %v4659_v21 = vpop.eup %4658 }
 0x25e   :  { %646 = vrot.lane.b32.xlu1 %v4659_v21, %s4880_s6 }
 0x25f   :  { %v4661_v23 = vpop.eup %4660 }
 0x260   :  { %v640_v24 = vadd.f32 1.0, %v4661_v23 }
 0x262   :  { %4662 = vrcp.f32 %v640_v24 }
 0x26c   :  { %v4663_v25 = vpop.eup %4662 }
 0x26d   :  { %v644_v28 = vmul.f32 0.0, %v4663_v25 }
 0x2d0   :  { %v647_v26 = vpop.permute.xlu1 %646 }
 0x2d1   :  { %v649_v27 = vmul.f32 %v4663_v25, %v647_v26 }
 0x2d3   :  { %651 = vrot.lane.b32.xlu0 %v649_v27, %s4881_s1 }
 0x345   :  { %v652_v29 = vpop.permute.xlu0 %651 }
 0x346   :  { %v654_v30 = vadd.f32 %v652_v29, %v644_v28 }
 0x348   :  { %4664 = vtanh.f32 %v654_v30 }
 0x352   :  { %v4665_v31 = vpop.eup %4664 }
 0x353   :  { %657 = vrot.lane.b32.xlu1 %v4665_v31, %s4880_s6 }
 0x3c5   :  { %v658_v32 = vpop.permute.xlu1 %657 }
 0x3c6   :  { %v660_v33 = vmul.f32 %v4663_v25, %v658_v32 }
 0x3c8   :  { %v740_v34 = vrot.slane %v660_v33, 2  ;;  %662 = vrot.lane.b32.xlu0 %v660_v33, %s4881_s1 }
 0x3ca   :  { %741 = vrot.lane.b32.xlu1 %v740_v34, %s4881_s1 }
 0x43a   :  { %v663_v35 = vpop.permute.xlu0 %662 }
 0x43b   :  { %4063 = vmatmul.mubr.msk.f32.vlgmr.msra.gmra.mrb[6].mxu0 %vm308_vm7, %v663_v35 }
 0x43c   :  { %v742_v36 = vpop.permute.xlu1 %741  ;;  %4474 = vmatpush3.bf16.msra.mxu0 %v5122_v52  ;;  %4084 = vmatprep.mubr.msk.f32.mxu0 %vm4878_vm0, %v4879_v11 }
 0x43d   :  { %4074 = vmatmul.mubr.msk.f32.vlgmr.msra.gmra.mrb[10].mxu1 %vm308_vm7, %v742_v36  ;;  %4475 = vmatprep.subr.bf16.mxu0 %v4877_v9 }
 0x43e   :  { %4480 = vmatpush3.bf16.msra.mxu1 %v5124_v53  ;;  %4095 = vmatprep.mubr.msk.f32.mxu1 %vm4878_vm0, %v4879_v11 }
 0x43f   :  { %4481 = vmatprep.subr.bf16.mxu1 %v4877_v9 }
 0x440   :  { %4477 = vmatpush3.bf16.msra.mxu0 %v5146_v61 }
 0x441   :  { %4484 = vmatprep.subr.bf16.mxu0 %v4877_v9 }
 0x442   :  { %4483 = vmatpush3.bf16.msra.mxu1 %v5148_v62 }
 0x443   :  { %4490 = vmatprep.subr.bf16.mxu1 %v4877_v9 }
 0x50e   :  { %v732_v37 = vpop.f32.mrb[6].mxu0 }
 0x50f   :  { %v737_v38 = vrot.slane %v732_v37, 6  ;;  %v4064_v39 = vpop.f32.mrb[7].mxu0 }
 0x510   :  { %v811_v40 = vpop.f32.mrb[10].mxu1 }
 0x511   :  { %v739_v41 = vadd.f32 %v737_v38, %v5186_v16  ;;  %v816_v42 = vrot.slane %v811_v40, 4  ;;  %v4075_v43 = vpop.f32.mrb[11].mxu1 }
 0x513   :  { %v818_v45 = vadd.f32 %v816_v42, %v5184_v12  ;;  %v820_v46 = vrot.slane %v739_v41, 2 }
 0x515   :  { %v823_v47 = vrot.slane %v818_v45, 2 }
 0x517   :  { %v825_v48 = vsel %vm635_vm8, %v820_v46, %v823_v47 }
 0x518   :  { %4666 = vtanh.f32 %v825_v48  ;;  %v3711_v50 = vmul.f32 -1.442695, %v825_v48 }
 0x51a   :  { %4668 = vpow2.f32 %v3711_v50 }
 0x522   :  { %v4667_v49 = vpop.eup %4666 }
 0x523   :  { %835 = vrot.lane.b32.xlu0 %v4667_v49, %s4880_s6 }
 0x524   :  { %v4669_v54 = vpop.eup %4668 }
 0x525   :  { %v829_v55 = vadd.f32 1.0, %v4669_v54 }
 0x527   :  { %4670 = vrcp.f32 %v829_v55 }
 0x531   :  { %v4671_v56 = vpop.eup %4670 }
 0x532   :  { %v833_v59 = vmul.f32 %v4671_v56, %v654_v30 }
 0x595   :  { %v836_v57 = vpop.permute.xlu0 %835 }
 0x596   :  { %v838_v58 = vmul.f32 %v4671_v56, %v836_v57 }
 0x598   :  { %840 = vrot.lane.b32.xlu1 %v838_v58, %s4881_s1 }
 0x60a   :  { %v841_v63 = vpop.permute.xlu1 %840 }
 0x60b   :  { %v843_v0 = vadd.f32 %v841_v63, %v833_v59 }
 0x60d   :  { %4672 = vtanh.f32 %v843_v0 }
 0x617   :  { %v4673_v1 = vpop.eup %4672 }
 0x618   :  { %846 = vrot.lane.b32.xlu0 %v4673_v1, %s4880_s6 }
 0x68a   :  { %v847_v2 = vpop.permute.xlu0 %846 }
 0x68b   :  { %v849_v3 = vmul.f32 %v4671_v56, %v847_v2 }
 0x68d   :  { %v929_v5 = vrot.slane %v849_v3, 2  ;;  %851 = vrot.lane.b32.xlu1 %v849_v3, %s4881_s1 }
 0x68f   :  { %930 = vrot.lane.b32.xlu0 %v929_v5, %s4881_s1 }
 0x6ff   :  { %v852_v6 = vpop.permute.xlu1 %851 }
 0x700   :  { %4085 = vmatmul.mubr.msk.f32.vlgmr.msra.gmra.mrb[8].mxu0 %vm308_vm7, %v852_v6 }
 0x701   :  { %v931_v8 = vpop.permute.xlu0 %930  ;;  %4486 = vmatpush3.bf16.msra.mxu0 %v5122_v52  ;;  %4106 = vmatprep.mubr.msk.f32.mxu0 %vm4878_vm0, %v4879_v11 }
 0x702   :  { %4096 = vmatmul.mubr.msk.f32.vlgmr.msra.gmra.mrb[12].mxu1 %vm308_vm7, %v931_v8  ;;  %4487 = vmatprep.subr.bf16.mxu0 %v4877_v9 }
 0x703   :  { %4492 = vmatpush3.bf16.msra.mxu1 %v5124_v53  ;;  %4117 = vmatprep.mubr.msk.f32.mxu1 %vm4878_vm0, %v4879_v11 }
 0x704   :  { %4493 = vmatprep.subr.bf16.mxu1 %v4877_v9 }
 0x705   :  { %4489 = vmatpush3.bf16.msra.mxu0 %v5146_v61 }
 0x706   :  { %4496 = vmatprep.subr.bf16.mxu0 %v4877_v9 }
 0x707   :  { %4495 = vmatpush3.bf16.msra.mxu1 %v5148_v62 }
 0x708   :  { %4502 = vmatprep.subr.bf16.mxu1 %v4877_v9 }
 0x7d3   :  { %v921_v10 = vpop.f32.mrb[8].mxu0 }
 0x7d4   :  { %v926_v13 = vrot.slane %v921_v10, 4  ;;  %v4086_v14 = vpop.f32.mrb[9].mxu0 }
 0x7d5   :  { %v1000_v15 = vpop.f32.mrb[12].mxu1 }
 0x7d6   :  { %v928_v17 = vadd.f32 %v926_v13, %v5186_v16  ;;  %v1005_v18 = vrot.slane %v1000_v15, 6  ;;  %v4097_v19 = vpop.f32.mrb[13].mxu1 }
 0x7d8   :  { %v1009_v20 = vrot.slane %v928_v17, 4  ;;  %v1007_v21 = vadd.f32 %v1005_v18, %v5184_v12 }
 0x7da   :  { %v1011_v22 = vsel %vm635_vm8, %v1009_v20, %v1007_v21 }
 0x7db   :  { %4674 = vtanh.f32 %v1011_v22  ;;  %v3714_v24 = vmul.f32 -1.442695, %v1011_v22 }
 0x7dd   :  { %4676 = vpow2.f32 %v3714_v24 }
 0x7e5   :  { %v4675_v23 = vpop.eup %4674 }
 0x7e6   :  { %1021 = vrot.lane.b32.xlu1 %v4675_v23, %s4880_s6 }
 0x7e7   :  { %v4677_v25 = vpop.eup %4676 }
 0x7e8   :  { %v1015_v26 = vadd.f32 1.0, %v4677_v25 }
 0x7ea   :  { %4678 = vrcp.f32 %v1015_v26 }
 0x7f4   :  { %v4679_v27 = vpop.eup %4678 }
 0x7f5   :  { %v1019_v30 = vmul.f32 %v4679_v27, %v843_v0 }
 0x858   :  { %v1022_v28 = vpop.permute.xlu1 %1021 }
 0x859   :  { %v1024_v29 = vmul.f32 %v4679_v27, %v1022_v28 }
 0x85b   :  { %1026 = vrot.lane.b32.xlu0 %v1024_v29, %s4881_s1 }
 0x8cd   :  { %v1027_v31 = vpop.permute.xlu0 %1026 }
 0x8ce   :  { %v1029_v32 = vadd.f32 %v1027_v31, %v1019_v30 }
 0x8d0   :  { %4680 = vtanh.f32 %v1029_v32 }
 0x8da   :  { %v4681_v33 = vpop.eup %4680 }
 0x8db   :  { %1032 = vrot.lane.b32.xlu1 %v4681_v33, %s4880_s6 }
 0x94d   :  { %v1033_v34 = vpop.permute.xlu1 %1032 }
 0x94e   :  { %v1035_v35 = vmul.f32 %v4679_v27, %v1033_v34 }
 0x950   :  { %v1115_v36 = vrot.slane %v1035_v35, 2  ;;  %1037 = vrot.lane.b32.xlu0 %v1035_v35, %s4881_s1 }
 0x952   :  { %1116 = vrot.lane.b32.xlu1 %v1115_v36, %s4881_s1 }
 0x9c2   :  { %v1038_v37 = vpop.permute.xlu0 %1037 }
 0x9c3   :  { %4107 = vmatmul.mubr.msk.f32.vlgmr.msra.gmra.mrb[10].mxu0 %vm308_vm7, %v1038_v37 }
 0x9c4   :  { %v1117_v38 = vpop.permute.xlu1 %1116  ;;  %4498 = vmatpush3.bf16.msra.mxu0 %v5122_v52  ;;  %4128 = vmatprep.mubr.msk.f32.mxu0 %vm4878_vm0, %v4879_v11 }
 0x9c5   :  { %4118 = vmatmul.mubr.msk.f32.vlgmr.msra.gmra.mrb[14].mxu1 %vm308_vm7, %v1117_v38  ;;  %4499 = vmatprep.subr.bf16.mxu0 %v4877_v9 }
 0x9c6   :  { %4504 = vmatpush3.bf16.msra.mxu1 %v5124_v53  ;;  %4139 = vmatprep.mubr.msk.f32.mxu1 %vm4878_vm0, %v4879_v11 }
 0x9c7   :  { %4505 = vmatprep.subr.bf16.mxu1 %v4877_v9 }
 0x9c8   :  { %4501 = vmatpush3.bf16.msra.mxu0 %v5146_v61 }
 0x9c9   :  { %4508 = vmatprep.subr.bf16.mxu0 %v4877_v9 }
 0x9ca   :  { %4507 = vmatpush3.bf16.msra.mxu1 %v5148_v62 }
 0x9cb   :  { %4514 = vmatprep.subr.bf16.mxu1 %v4877_v9 }
 0xa96   :  { %v1107_v39 = vpop.f32.mrb[10].mxu0 }
 0xa97   :  { %v1112_v40 = vrot.slane %v1107_v39, 2  ;;  %v4108_v41 = vpop.f32.mrb[11].mxu0 }
 0xa98   :  { %v1186_v42 = vpop.f32.mrb[14].mxu1 }
 0xa99   :  { %v1114_v43 = vadd.f32 %v1112_v40, %v5186_v16  ;;  %v1190_v45 = vadd.f32 %v1186_v42, %v5184_v12  ;;  %v4119_v46 = vpop.f32.mrb[15].mxu1 }
 0xa9b   :  { %v1192_v47 = vrot.slane %v1114_v43, 6  ;;  %v1195_v48 = vrot.slane %v1190_v45, 6 }
 0xa9d   :  { %v1197_v49 = vsel %vm635_vm8, %v1192_v47, %v1195_v48 }
 0xa9e   :  { %4682 = vtanh.f32 %v1197_v49  ;;  %v3717_v54 = vmul.f32 -1.442695, %v1197_v49 }
 0xaa0   :  { %4684 = vpow2.f32 %v3717_v54 }
 0xaa8   :  { %v4683_v50 = vpop.eup %4682 }
 0xaa9   :  { %1207 = vrot.lane.b32.xlu0 %v4683_v50, %s4880_s6 }
 0xaaa   :  { %v4685_v55 = vpop.eup %4684 }
 0xaab   :  { %v1201_v56 = vadd.f32 1.0, %v4685_v55 }
 0xaad   :  { %4686 = vrcp.f32 %v1201_v56 }
 0xab7   :  { %v4687_v57 = vpop.eup %4686 }
 0xab8   :  { %v1205_v12 = vmul.f32 %v4687_v57, %v1029_v32 }
 0xb1b   :  { %v1208_v58 = vpop.permute.xlu0 %1207 }
 0xb1c   :  { %v1210_v59 = vmul.f32 %v4687_v57, %v1208_v58 }
 0xb1e   :  { %1212 = vrot.lane.b32.xlu1 %v1210_v59, %s4881_s1 }
 0xb90   :  { %v1213_v16 = vpop.permute.xlu1 %1212 }
 0xb91   :  { %v1215_v63 = vadd.f32 %v1213_v16, %v1205_v12 }
 0xb93   :  { %4688 = vtanh.f32 %v1215_v63 }
 0xb9d   :  { %v4689_v0 = vpop.eup %4688 }
 0xb9e   :  { %1218 = vrot.lane.b32.xlu0 %v4689_v0, %s4880_s6 }
 0xc10   :  { %v1219_v1 = vpop.permute.xlu0 %1218 }
 0xc11   :  { %v1221_v2 = vmul.f32 %v4687_v57, %v1219_v1 }
 0xc13   :  { %v1298_v3 = vrot.slane %v1221_v2, 2  ;;  %1223 = vrot.lane.b32.xlu0 %v1221_v2, %s4881_s1 }
 0xc15   :  { %1299 = vrot.lane.b32.xlu1 %v1298_v3, %s4881_s1 }
 0xc85   :  { %v1224_v5 = vpop.permute.xlu0 %1223 }
 0xc86   :  { %4129 = vmatmul.mubr.msk.f32.vlgmr.msra.gmra.mrb[12].mxu0 %vm308_vm7, %v1224_v5 }
 0xc87   :  { %v1300_v6 = vpop.permute.xlu1 %1299  ;;  %4510 = vmatpush3.bf16.msra.mxu0 %v5122_v52  ;;  %4150 = vmatprep.mubr.msk.f32.mxu0 %vm4878_vm0, %v4879_v11 }
 0xc88   :  { %4140 = vmatmul.mubr.msk.f32.vlgmr.msra.gmra.mrb[16].mxu1 %vm308_vm7, %v1300_v6  ;;  %4511 = vmatprep.subr.bf16.mxu0 %v4877_v9 }
 0xc89   :  { %4516 = vmatpush3.bf16.msra.mxu1 %v5124_v53  ;;  %4161 = vmatprep.mubr.msk.f32.mxu1 %vm4878_vm0, %v4879_v11 }
 0xc8a   :  { %4517 = vmatprep.subr.bf16.mxu1 %v4877_v9 }
 0xc8b   :  { %4513 = vmatpush3.bf16.msra.mxu0 %v5146_v61 }
 0xc8c   :  { %4520 = vmatprep.subr.bf16.mxu0 %v4877_v9 }
 0xc8d   :  { %4519 = vmatpush3.bf16.msra.mxu1 %v5148_v62 }
 0xc8e   :  { %4526 = vmatprep.subr.bf16.mxu1 %v4877_v9 }
 0xd59   :  { %v1293_v8 = vpop.f32.mrb[12].mxu0 }
 0xd5a   :  { %v4130_v10 = vpop.f32.mrb[13].mxu0  ;;  %v1297_v18 = vadd.f32 %v1293_v8, %v5180_v4 }
 0xd5b   :  { %v1369_v13 = vpop.f32.mrb[16].mxu1 }
 0xd5c   :  { %v1374_v14 = vrot.slane %v1369_v13, 2  ;;  %v4141_v15 = vpop.f32.mrb[17].mxu1 }
 0xd5e   :  { %v1376_v17 = vadd.f32 %v1374_v14, %v5182_v7 }
 0xd60   :  { %v1378_v19 = vrot.slane %v1376_v17, 4 }
 0xd62   :  { %v1380_v20 = vsel %vm635_vm8, %v1297_v18, %v1378_v19 }
 0xd63   :  { %4690 = vtanh.f32 %v1380_v20  ;;  %v3720_v22 = vmul.f32 -1.442695, %v1380_v20 }
 0xd65   :  { %4692 = vpow2.f32 %v3720_v22 }
 0xd6d   :  { %v4691_v21 = vpop.eup %4690 }
 0xd6e   :  { %1390 = vrot.lane.b32.xlu1 %v4691_v21, %s4880_s6 }
 0xd6f   :  { %v4693_v23 = vpop.eup %4692 }
 0xd70   :  { %v1384_v24 = vadd.f32 1.0, %v4693_v23 }
 0xd72   :  { %4694 = vrcp.f32 %v1384_v24 }
 0xd7c   :  { %v4695_v25 = vpop.eup %4694 }
 0xd7d   :  { %v1388_v28 = vmul.f32 %v4695_v25, %v1215_v63 }
 0xde0   :  { %v1391_v26 = vpop.permute.xlu1 %1390 }
 0xde1   :  { %v1393_v27 = vmul.f32 %v4695_v25, %v1391_v26 }
 0xde3   :  { %1395 = vrot.lane.b32.xlu0 %v1393_v27, %s4881_s1 }
 0xe55   :  { %v1396_v29 = vpop.permute.xlu0 %1395 }
 0xe56   :  { %v1398_v30 = vadd.f32 %v1396_v29, %v1388_v28 }
 0xe58   :  { %4696 = vtanh.f32 %v1398_v30 }
 0xe62   :  { %v4697_v31 = vpop.eup %4696 }
 0xe63   :  { %1401 = vrot.lane.b32.xlu1 %v4697_v31, %s4880_s6 }
 0xed5   :  { %v1402_v32 = vpop.permute.xlu1 %1401 }
 0xed6   :  { %v1404_v33 = vmul.f32 %v4695_v25, %v1402_v32 }
 0xed8   :  { %v1484_v34 = vrot.slane %v1404_v33, 2  ;;  %1406 = vrot.lane.b32.xlu0 %v1404_v33, %s4881_s1 }
 0xeda   :  { %1485 = vrot.lane.b32.xlu1 %v1484_v34, %s4881_s1 }
 0xf4a   :  { %v1407_v35 = vpop.permute.xlu0 %1406 }
 0xf4b   :  { %4151 = vmatmul.mubr.msk.f32.vlgmr.msra.gmra.mrb[14].mxu0 %vm308_vm7, %v1407_v35 }
 0xf4c   :  { %v1486_v36 = vpop.permute.xlu1 %1485  ;;  %4522 = vmatpush3.bf16.msra.mxu0 %v5122_v52  ;;  %4172 = vmatprep.mubr.msk.f32.mxu0 %vm4878_vm0, %v4879_v11 }
 0xf4d   :  { %4162 = vmatmul.mubr.msk.f32.vlgmr.msra.gmra.mrb[18].mxu1 %vm308_vm7, %v1486_v36  ;;  %4523 = vmatprep.subr.bf16.mxu0 %v4877_v9 }
 0xf4e   :  { %4528 = vmatpush3.bf16.msra.mxu1 %v5124_v53  ;;  %4183 = vmatprep.mubr.msk.f32.mxu1 %vm4878_vm0, %v4879_v11 }
 0xf4f   :  { %4529 = vmatprep.subr.bf16.mxu1 %v4877_v9 }
 0xf50   :  { %4525 = vmatpush3.bf16.msra.mxu0 %v5146_v61 }
 0xf51   :  { %4532 = vmatprep.subr.bf16.mxu0 %v4877_v9 }
 0xf52   :  { %4531 = vmatpush3.bf16.msra.mxu1 %v5148_v62 }
 0xf53   :  { %4538 = vmatprep.subr.bf16.mxu1 %v4877_v9 }
0x101e   :  { %v1476_v37 = vpop.f32.mrb[14].mxu0 }
0x101f   :  { %v1481_v38 = vrot.slane %v1476_v37, 6  ;;  %v4152_v39 = vpop.f32.mrb[15].mxu0 }
0x1020   :  { %v1555_v40 = vpop.f32.mrb[18].mxu1 }
0x1021   :  { %v1483_v41 = vadd.f32 %v1481_v38, %v5180_v4  ;;  %v1560_v42 = vrot.slane %v1555_v40, 4  ;;  %v4163_v43 = vpop.f32.mrb[19].mxu1 }
0x1023   :  { %v1562_v45 = vadd.f32 %v1560_v42, %v5182_v7  ;;  %v1564_v46 = vrot.slane %v1483_v41, 2 }
0x1025   :  { %v1567_v47 = vrot.slane %v1562_v45, 2 }
0x1027   :  { %v1569_v48 = vsel %vm635_vm8, %v1564_v46, %v1567_v47 }
0x1028   :  { %4698 = vtanh.f32 %v1569_v48  ;;  %v3723_v50 = vmul.f32 -1.442695, %v1569_v48 }
0x102a   :  { %4700 = vpow2.f32 %v3723_v50 }
0x1032   :  { %v4699_v49 = vpop.eup %4698 }
0x1033   :  { %1579 = vrot.lane.b32.xlu0 %v4699_v49, %s4880_s6 }
0x1034   :  { %v4701_v54 = vpop.eup %4700 }
0x1035   :  { %v1573_v55 = vadd.f32 1.0, %v4701_v54 }
0x1037   :  { %4702 = vrcp.f32 %v1573_v55  ;;  %v1975_v55 = vld [vmem:[%s5741_s11] sm:$0xff] }
0x1041   :  { %v4703_v56 = vpop.eup %4702 }
0x1042   :  { %v1577_v59 = vmul.f32 %v4703_v56, %v1398_v30 }
0x10a5   :  { %v1580_v57 = vpop.permute.xlu0 %1579 }
0x10a6   :  { %v1582_v58 = vmul.f32 %v4703_v56, %v1580_v57  ;;  %v2063_v57 = vld [vmem:[%s5743_s13] sm:$0xff] }
0x10a8   :  { %1584 = vrot.lane.b32.xlu1 %v1582_v58, %s4881_s1 }
0x111a   :  { %v1585_v12 = vpop.permute.xlu1 %1584 }
0x111b   :  { %v1587_v16 = vadd.f32 %v1585_v12, %v1577_v59  ;;  %v2064_v59 = vld [vmem:[%s5743_s13 + $0x8] sm:$0xff]  ;;  %v1977_v12 = vld [vmem:[%s5741_s11 + $0x10] sm:$0xff] }
0x111d   :  { %4704 = vtanh.f32 %v1587_v16 }
0x1127   :  { %v4705_v63 = vpop.eup %4704 }
0x1128   :  { %1590 = vrot.lane.b32.xlu0 %v4705_v63, %s4880_s6  ;;  %v4557_v63 = vpack.c.bf16 %v2064_v59, %v2063_v57  ;;  %v2276_v57 = vld [vmem:[%s5747_s17 + $0x18] sm:$0xff]  ;;  %v291_v59 = vld [vmem:[%s5786_s5] sm:$0xff] }
0x119a   :  { %v1591_v0 = vpop.permute.xlu0 %1590 }
0x119b   :  { %v1593_v1 = vmul.f32 %v4703_v56, %v1591_v0  ;;  %v1976_v56 = vld [vmem:[%s5741_s11 + $0x8] sm:$0xff]  ;;  %v2065_v0 = vld [vmem:[%s5743_s13 + $0x10] sm:$0xff] }
0x119c   :  { %v4545_v58 = vpack.c.bf16 %v1976_v56, %v1975_v55  ;;  %v2275_v56 = vld [vmem:[%s5747_s17 + $0x10] sm:$0xff] }
0x119d   :  { %v1673_v2 = vrot.slane %v1593_v1, 2  ;;  %1595 = vrot.lane.b32.xlu1 %v1593_v1, %s4881_s1  ;;  %v2066_v1 = vld [vmem:[%s5743_s13 + $0x18] sm:$0xff] }
0x119f   :  { %1674 = vrot.lane.b32.xlu0 %v1673_v2, %s4881_s1 }
0x120f   :  { %v1596_v3 = vpop.permute.xlu1 %1595 }
0x1210   :  { %4173 = vmatmul.mubr.msk.f32.vlgmr.msra.gmra.mrb[16].mxu0 %vm308_vm7, %v1596_v3  ;;  %v4560_v3 = vpack.c.bf16 %v2066_v1, %v2065_v0  ;;  %v293_v0 = vld [vmem:[%s5786_s5 + $0x10] sm:$0xf]  ;;  %v2446_v1 = vld [vmem:[%s5749_s19 + $0x8] sm:$0xff] }
0x1211   :  { %v1675_v5 = vpop.permute.xlu0 %1674  ;;  %4534 = vmatpush3.bf16.msra.mxu0 %v5122_v52  ;;  %4194 = vmatprep.mubr.msk.f32.mxu0 %vm4878_vm0, %v4879_v11 }
0x1212   :  { %4184 = vmatmul.mubr.msk.f32.vlgmr.msra.gmra.mrb[20].mxu1 %vm308_vm7, %v1675_v5  ;;  %4535 = vmatprep.subr.bf16.mxu0 %v4877_v9  ;;  %v1979_v5 = vld [vmem:[%s5741_s11 + $0x20] sm:$0xff] }
0x1213   :  { %4540 = vmatpush3.bf16.msra.mxu1 %v5124_v53  ;;  %4205 = vmatprep.mubr.msk.f32.mxu1 %vm4878_vm0, %v4879_v11 }
0x1214   :  { %4541 = vmatprep.subr.bf16.mxu1 %v4877_v9 }
0x1215   :  { %4537 = vmatpush3.bf16.msra.mxu0 %v5146_v61 }
0x1216   :  { %4544 = vmatprep.subr.bf16.mxu0 %v4877_v9 }
0x1217   :  { %4543 = vmatpush3.bf16.msra.mxu1 %v5148_v62 }
0x1218   :  { %4556 = vmatprep.subr.bf16.mxu1 %v4877_v9 }
0x12e3   :  { %v1665_v52 = vpop.f32.mrb[16].mxu0 }
0x12e4   :  { %v1670_v6 = vrot.slane %v1665_v52, 4  ;;  %v4174_v8 = vpop.f32.mrb[17].mxu0  ;;  %v1980_v52 = vld [vmem:[%s5741_s11 + $0x28] sm:$0xff] }
0x12e5   :  { %v1744_v10 = vpop.f32.mrb[20].mxu1  ;;  %v2068_v8 = vld [vmem:[%s5743_s13 + $0x28] sm:$0xff] }
0x12e6   :  { %v1672_v13 = vadd.f32 %v1670_v6, %v5180_v4  ;;  %v1749_v53 = vrot.slane %v1744_v10, 6  ;;  %v4185_v14 = vpop.f32.mrb[21].mxu1  ;;  %v2067_v6 = vld [vmem:[%s5743_s13 + $0x20] sm:$0xff]  ;;  %v4551_v10 = vpack.c.bf16 %v1980_v52, %v1979_v5 }
0x12e7   :  { %v1981_v14 = vld [vmem:[%s5741_s11 + $0x30] sm:$0xff]  ;;  %v3734_v52 = vld [vmem:[%s5746_s16] ss:$0 sm:$0xff] }
0x12e8   :  { %v1753_v15 = vrot.slane %v1672_v13, 4  ;;  %v1751_v17 = vadd.f32 %v1749_v53, %v5182_v7  ;;  %v4563_v53 = vpack.c.bf16 %v2068_v8, %v2067_v6 }
0x12ea   :  { %v1755_v18 = vsel %vm635_vm8, %v1753_v15, %v1751_v17  ;;  %v1982_v15 = vld [vmem:[%s5741_s11 + $0x38] sm:$0xff]  ;;  %v2069_v17 = vld [vmem:[%s5743_s13 + $0x30] sm:$0xff] }
0x12eb   :  { %4706 = vtanh.f32 %v1755_v18  ;;  %v3726_v62 = vmul.f32 -1.442695, %v1755_v18  ;;  %v4554_v18 = vpack.c.bf16 %v1982_v15, %v1981_v14 }
0x12ed   :  { %4708 = vpow2.f32 %v3726_v62 }
0x12f5   :  { %v4707_v61 = vpop.eup %4706 }
0x12f6   :  { %1765 = vrot.lane.b32.xlu1 %v4707_v61, %s4880_s6  ;;  %v2070_v61 = vld [vmem:[%s5743_s13 + $0x38] sm:$0xff] }
0x12f7   :  { %v4709_v19 = vpop.eup %4708  ;;  %v4566_v62 = vpack.c.bf16 %v2070_v61, %v2069_v17  ;;  %v3736_v17 = vld [vmem:[%s5750_s20] ss:$0 sm:$0xff] }
0x12f8   :  { %v1759_v20 = vadd.f32 1.0, %v4709_v19 }
0x12fa   :  { %4710 = vrcp.f32 %v1759_v20 }
0x1304   :  { %v4711_v21 = vpop.eup %4710 }
0x1305   :  { %v1763_v24 = vmul.f32 %v4711_v21, %v1587_v16  ;;  %v1978_v16 = vld [vmem:[%s5741_s11 + $0x18] sm:$0xff] }
0x1306   :  { %v4548_v2 = vpack.c.bf16 %v1978_v16, %v1977_v12  ;;  %v294_v12 = vmul.f32 %v291_v59, %v5106_v44  ;;  %v292_v16 = vld [vmem:[%s5786_s5 + $0x8] sm:$0xff]  ;;  %v296_v44 = vmul.f32 %v293_v0, %v5144_v60  ;;  %v2447_v60 = vld [vmem:[%s5749_s19 + $0x10] sm:$0xff] }
0x1368   :  { %v1766_v22 = vpop.permute.xlu1 %1765 }
0x1369   :  { %v1768_v23 = vmul.f32 %v4711_v21, %v1766_v22 }
0x136b   :  { %1770 = vrot.lane.b32.xlu0 %v1768_v23, %s4881_s1 }
0x13dd   :  { %v1771_v25 = vpop.permute.xlu0 %1770 }
0x13de   :  { %v1773_v26 = vadd.f32 %v1771_v25, %v1763_v24  ;;  %v2176_v25 = vld [vmem:[%s5745_s15] sm:$0xff] }
0x13e0   :  { %4712 = vtanh.f32 %v1773_v26 }
0x13ea   :  { %v4713_v27 = vpop.eup %4712 }
0x13eb   :  { %1776 = vrot.lane.b32.xlu1 %v4713_v27, %s4880_s6  ;;  %v2373_v27 = vld [vmem:[%s5748_s18] sm:$0xff] }
0x145d   :  { %v1777_v28 = vpop.permute.xlu1 %1776 }
0x145e   :  { %v1779_v29 = vmul.f32 %v4711_v21, %v1777_v28 }
0x1460   :  { %v1859_v30 = vrot.slane %v1779_v29, 2  ;;  %1781 = vrot.lane.b32.xlu0 %v1779_v29, %s4881_s1  ;;  %v2374_v29 = vld [vmem:[%s5748_s18 + $0x8] sm:$0xff] }
0x1462   :  { %1860 = vrot.lane.b32.xlu1 %v1859_v30, %s4881_s1  ;;  %v4578_v30 = vpack.c.bf16 %v2374_v29, %v2373_v27 }
0x14d2   :  { %v1782_v31 = vpop.permute.xlu0 %1781 }
0x14d3   :  { %4195 = vmatmul.mubr.msk.f32.vlgmr.msra.gmra.mrb[18].mxu0 %vm308_vm7, %v1782_v31  ;;  %v3730_v31 = vld [vmem:[%s5742_s12] ss:$0 sm:$0xff] }
0x14d4   :  { %v1861_v32 = vpop.permute.xlu1 %1860  ;;  %4224 = vmatprep.mubr.msk.f32.mxu0 %vm4878_vm0, %v4879_v11  ;;  %4546 = vmatpush3.bf16.msra.mxu0 %v4545_v58  ;;  %v4575_v58 = vpack.c.bf16 %v2276_v57, %v2275_v56 }
0x14d5   :  { %4206 = vmatmul.mubr.msk.f32.vlgmr.msra.gmra.mrb[22].mxu1 %vm308_vm7, %v1861_v32  ;;  %4547 = vmatprep.subr.bf16.mxu0 %v4877_v9  ;;  %v3732_v32 = vld [vmem:[%s5744_s14] ss:$0 sm:$0xff] }
0x14d6   :  { %4243 = vmatprep.mubr.msk.f32.mxu1 %vm4878_vm0, %v4879_v11  ;;  %4558 = vmatpush3.bf16.msra.mxu1 %v4557_v63  ;;  %v295_v63 = vmul.f32 %v292_v16, %v5120_v51  ;;  %v2445_v51 = vld [vmem:[%s5749_s19] sm:$0xff] }
0x14d7   :  { %4559 = vmatprep.subr.bf16.mxu1 %v4877_v9 }
0x14d8   :  { %4549 = vmatpush3.bf16.msra.mxu0 %v4548_v2  ;;  %v5475_v2 = vpack.c.bf16 %v2446_v1, %v2445_v51 }
0x14d9   :  { %4550 = vmatprep.subr.bf16.mxu0 %v4877_v9 }
0x14da   :  { %4561 = vmatpush3.bf16.msra.mxu1 %v4560_v3  ;;  %v2448_v3 = vld [vmem:[%s5749_s19 + $0x18] sm:$0xff]  ;;  %s4882_s19 = smov 96  }
0x14db   :  { %4562 = vmatprep.subr.bf16.mxu1 %v4877_v9  ;;  %v5487_v5 = vpack.c.bf16 %v2448_v3, %v2447_v60 }
0x14dc   :  { %4552 = vmatpush3.bf16.msra.mxu0 %v4551_v10 }
0x14dd   :  { %4553 = vmatprep.subr.bf16.mxu0 %v4877_v9 }
0x14de   :  { %4564 = vmatpush3.bf16.msra.mxu1 %v4563_v53 }
0x14df   :  { %4565 = vmatprep.subr.bf16.mxu1 %v4877_v9 }
0x14e0   :  { %4555 = vmatpush3.bf16.msra.mxu0 %v4554_v18 }
0x14e1   :  { %4568 = vmatprep.subr.bf16.mxu0 %v4877_v9 }
0x14e2   :  { %4567 = vmatpush3.bf16.msra.mxu1 %v4566_v62 }
0x14e3   :  { %4577 = vmatprep.subr.bf16.mxu1 %v4877_v9 }
0x15a6   :  { %v1851_v33 = vpop.f32.mrb[18].mxu0 }
0x15a7   :  { %v1856_v34 = vrot.slane %v1851_v33, 2  ;;  %v4196_v35 = vpop.f32.mrb[19].mxu0 }
0x15a8   :  { %v1930_v36 = vpop.f32.mrb[22].mxu1 }
0x15a9   :  { %v1858_v37 = vadd.f32 %v1856_v34, %v5180_v4  ;;  %v1934_v38 = vadd.f32 %v1930_v36, %v5182_v7  ;;  %v4207_v39 = vpop.f32.mrb[23].mxu1 }
0x15ab   :  { %v1936_v40 = vrot.slane %v1858_v37, 6  ;;  %v1939_v41 = vrot.slane %v1934_v38, 6 }
0x15ad   :  { %v1941_v42 = vsel %vm635_vm8, %v1936_v40, %v1939_v41 }
0x15ae   :  { %4714 = vtanh.f32 %v1941_v42  ;;  %v3729_v45 = vmul.f32 -1.442695, %v1941_v42 }
0x15b0   :  { %4716 = vpow2.f32 %v3729_v45 }
0x15b8   :  { %v4715_v43 = vpop.eup %4714 }
0x15b9   :  { %1951 = vrot.lane.b32.xlu0 %v4715_v43, %s4880_s6 }
0x15ba   :  { %v4717_v46 = vpop.eup %4716 }
0x15bb   :  { %v1945_v47 = vadd.f32 1.0, %v4717_v46 }
0x15bd   :  { %4718 = vrcp.f32 %v1945_v47  ;;  %v2151_v47 = vld [vmem:[%s5785_s3] sm:$0x3] }
0x15c7   :  { %v4719_v48 = vpop.eup %4718 }
0x15c8   :  { %v1949_v4 = vmul.f32 %v4719_v48, %v1773_v26  ;;  %v2177_v26 = vld [vmem:[%s5745_s15 + $0x8] sm:$0xff]  ;;  %s4884_s15 = smov [#allocation2]  }
0x15c9   :  { %v4569_v28 = vpack.c.bf16 %v2177_v26, %v2176_v25  ;;  %s3660_s7 = sshll.u32 %s4884_s15, 4  ;;  %s3661_s7 = int_to_ptr.vmem [resolvable:$true] %s3660_s7 }
0x162b   :  { %v1952_v49 = vpop.permute.xlu0 %1951 }
0x162c   :  { %v1954_v50 = vmul.f32 %v4719_v48, %v1952_v49  ;;  %v2274_v49 = vld [vmem:[%s5747_s17 + $0x8] sm:$0xff] }
0x162e   :  { %1956 = vrot.lane.b32.xlu1 %v1954_v50, %s4881_s1 }
0x16a0   :  { %v1957_v7 = vpop.permute.xlu1 %1956 }
0x16a1   :  { %v1959_v54 = vadd.f32 %v1957_v7, %v1949_v4 }
0x16a3   :  { %4720 = vtanh.f32 %v1959_v54 }
0x16ad   :  { %v4721_v13 = vpop.eup %4720 }
0x16ae   :  { %1962 = vrot.lane.b32.xlu0 %v4721_v13, %s4880_s6 }
0x1720   :  { %v1963_v19 = vpop.permute.xlu0 %1962 }
0x1721   :  { %v1965_v20 = vmul.f32 %v4719_v48, %v1963_v19  ;;  %v2273_v48 = vld [vmem:[%s5747_s17] sm:$0xff] }
0x1722   :  { %v4572_v54 = vpack.c.bf16 %v2274_v49, %v2273_v48 }
0x1723   :  { %v1970_v21 = vrot.slane %v1965_v20, 2  ;;  %1967 = vrot.lane.b32.xlu1 %v1965_v20, %s4881_s1 }
0x1725   :  { %1971 = vrot.lane.b32.xlu0 %v1970_v21, %s4880_s6 }
0x1795   :  { %v1968_v22 = vpop.permute.xlu1 %1967 }
0x1797   :  { %v1972_v23 = vpop.permute.xlu0 %1971 }
0x1798   :  { %v1974_v24 = vsel %vm308_vm7, %v1968_v22, %v1972_v23 }
0x1799   :  { %4225 = vmatmul.mubr.msk.f32.vlgmr.msra.gmra.mrb[20].mxu0 %vm102_vm1, %v1974_v24  ;;  %4244 = vmatmul.mubr.msk.f32.vlgmr.msra.gmra.mrb[24].mxu1 %vm102_vm1, %v1974_v24 }
0x179a   :  { %4250 = vmatprep.mubr.msk.f32.mxu0 %vm4878_vm0, %v4879_v11  ;;  %4274 = vmatprep.mubr.msk.f32.mxu1 %vm4878_vm0, %v4879_v11 }
0x179b   :  { %4570 = vmatpush3.bf16.msra.mxu0 %v4569_v28  ;;  %4579 = vmatpush3.bf16.msra.mxu1 %v4578_v30 }
0x179c   :  { %4571 = vmatprep.subr.bf16.mxu0 %v4877_v9  ;;  %4580 = vmatprep.subr.bf16.mxu1 %v4877_v9 }
0x186c   :  { %v2059_v33 = vpop.f32.mrb[20].mxu0  ;;  %v2144_v34 = vpop.f32.mrb[24].mxu1 }
0x186d   :  { %v2060_v35 = vadd.f32 %v3730_v31, %v2059_v33  ;;  %v2145_v36 = vadd.f32 %v3732_v32, %v2144_v34  ;;  %v4226_v37 = vpop.f32.mrb[21].mxu0  ;;  %v4245_v38 = vpop.f32.mrb[25].mxu1 }
0x186f   :  { %v2155_v39 = vmul.f32 %v2060_v35, %v2060_v35  ;;  %v2148_v40 = vmul.f32 0.5, %v2145_v36  ;;  %v2154_v41 = vadd.f32 1.0, %v2145_v36  ;;  %v2157_v42 = vmul.f32 1.442695, %v2145_v36 }
0x1871   :  { %v2149_v43 = vmul.f32 1.442695, %v2148_v40  ;;  %4722 = vpow2.f32 %v2157_v42  ;;  %v2156_v45 = vsub.f32 %v2154_v41, %v2155_v39 }
0x1873   :  { %4724 = vpow2.f32 %v2149_v43 }
0x187b   :  { %v4723_v46 = vpop.eup %4722 }
0x187c   :  { %v5434_v50 = vsub.f32 %v2156_v45, %v4723_v46 }
0x187d   :  { %v4725_v4 = vpop.eup %4724 }
0x187e   :  { %v2152_v7 = vmul.f32 %v4725_v4, %v2151_v47 }
0x1880   :  { %v2153_v55 = vadd.f32 %v2152_v7, %v2060_v35 }
0x1882   :  { %4251 = vmatmul.mubr.msk.f32.vlgmr.msra.gmra.mrb[22].mxu0 %vm2185_vm9, %v2153_v55  ;;  %4275 = vmatmul.mubr.msk.f32.vlgmr.msra.gmra.mrb[26].mxu1 %vm2185_vm9, %v2153_v55 }
0x1883   :  { %4573 = vmatpush3.bf16.msra.mxu0 %v4572_v54  ;;  %4261 = vmatprep.mubr.msk.f32.mxu0 %vm4878_vm0, %v4879_v11 }
0x1884   :  { %4574 = vmatprep.subr.bf16.mxu0 %v4877_v9  ;;  %4285 = vmatprep.mubr.msk.f32.mxu1 %vm4878_vm0, %v4879_v11 }
0x1885   :  { %4582 = vmatpush3.bf16.msra.mxu1 %v5475_v2 }
0x1886   :  { %4583 = vmatprep.subr.bf16.mxu1 %v4877_v9 }
0x1887   :  { %4576 = vmatpush3.bf16.msra.mxu0 %v4575_v58 }
0x1888   :  { %4586 = vmatprep.subr.bf16.mxu0 %v4877_v9 }
0x1889   :  { %4585 = vmatpush3.bf16.msra.mxu1 %v5487_v5 }
0x188a   :  { %4262 = vmatmul.mubr.msk.f32.vlgmr.msra.gmra.mrb[24].mxu0 %vm308_vm7, %v294_v12  ;;  %4592 = vmatprep.subr.bf16.mxu1 %v4877_v9 }
0x188b   :  { %4264 = vmatprep.mubr.msk.f32.mxu0 %vm4878_vm0, %v4879_v11  ;;  %4588 = vmatpush3.bf16.msra.mxu0 %v5475_v2 }
0x188c   :  { %4589 = vmatprep.subr.bf16.mxu0 %v4877_v9 }
0x188e   :  { %4265 = vmatmul.mubr.msk.f32.gmra.mrb[26].mxu0 %vm308_vm7, %v295_v63 }
0x188f   :  { %4267 = vmatprep.mubr.msk.f32.mxu0 %vm4878_vm0, %v4879_v11  ;;  %4591 = vmatpush3.bf16.msra.mxu0 %v5487_v5 }
0x1890   :  { %4598 = vmatprep.subr.bf16.mxu0 %v4877_v9 }
0x1892   :  { %4268 = vmatmul.mubr.msk.f32.gmra.mrb[28].mxu0 %vm308_vm7, %v296_v44 }
0x1893   :  { %4296 = vmatprep.mubr.msk.f32.mxu0 %vm4878_vm0, %v4879_v11 }
0x1955   :  { %v2255_v6 = vpop.f32.mrb[22].mxu0  ;;  %v2441_v8 = vpop.f32.mrb[26].mxu1 }
0x1956   :  { %v2256_v10 = vadd.f32 %v3734_v52, %v2255_v6  ;;  %v4252_v13 = vpop.f32.mrb[23].mxu0  ;;  %v4276_v53 = vpop.f32.mrb[27].mxu1  ;;  %v2553_v19 = vrot.slane %v2441_v8, 6  ;;  %v2662_v20 = vrot.slane %v2441_v8, 4  ;;  %v2772_v21 = vrot.slane %v2441_v8, 2 }
0x1958   :  { %v2259_v14 = vmax.f32 %v2256_v10, 0.0 }
0x195a   :  { %2269 = vrot.lane.b32.xlu0 %v2259_v14, %s4882_s19  ;;  %v2261_v15 = vrot.slane %v2259_v14, 7  ;;  %v2267_v38 = vrot.slane %v2259_v14, 1 }
0x195c   :  { %2262 = vrot.lane.b32.xlu1 %v2261_v15, %s4882_s19 }
0x195d   :  { %v2359_v18 = vpop.f32.mrb[24].mxu0 }
0x195e   :  { %v2360_v61 = vadd.f32 %v3736_v17, %v2359_v18  ;;  %v4263_v62 = vpop.f32.mrb[25].mxu0 }
0x1960   :  { %v2449_v22 = vadd.f32 %v2441_v8, %v2360_v61  ;;  %v5501_v23 = vadd.f32 %v2553_v19, %v2360_v61  ;;  %v5503_v24 = vadd.f32 %v2662_v20, %v2360_v61  ;;  %v5505_v25 = vadd.f32 %v2772_v21, %v2360_v61 }
0x1961   :  { %v2364_v26 = vpop.f32.mrb[26].mxu0 }
0x1962   :  { %v2365_v27 = vadd.f32 %v3736_v17, %v2364_v26  ;;  %v4266_v28 = vpop.f32.mrb[27].mxu0 }
0x1964   :  { %v5507_v29 = vadd.f32 %v2441_v8, %v2365_v27  ;;  %v5509_v30 = vadd.f32 %v2553_v19, %v2365_v27  ;;  %v5511_v31 = vadd.f32 %v2662_v20, %v2365_v27  ;;  %v5513_v32 = vadd.f32 %v2772_v21, %v2365_v27 }
0x1965   :  { %v2369_v33 = vpop.f32.mrb[28].mxu0 }
0x1966   :  { %v2370_v34 = vadd.f32 %v3736_v17, %v2369_v33  ;;  %v4269_v35 = vpop.f32.mrb[29].mxu0 }
0x1968   :  { %v5515_v36 = vadd.f32 %v2553_v19, %v2370_v34  ;;  %v5517_v37 = vadd.f32 %v2441_v8, %v2370_v34 }
0x19cc   :  { %v2270_v39 = vpop.permute.xlu0 %2269 }
0x19cd   :  { %v2272_v40 = vsel %vm2265_vm10, %v2267_v38, %v2270_v39 }
0x19ce   :  { %2532 = vrot.lane.b32.xlu0 %v2272_v40, %s4881_s1  ;;  %v2263_v41 = vpop.permute.xlu1 %2262 }
0x19cf   :  { %v2266_v42 = vsel %vm2265_vm10, %v2259_v14, %v2263_v41 }
0x19d0   :  { %4286 = vmatmul.mubr.msk.f32.vlgmr.msra.gmra.mrb[28].mxu1 %vm308_vm7, %v2266_v42 }
0x19d1   :  { %4594 = vmatpush3.bf16.msra.mxu1 %v5475_v2  ;;  %4307 = vmatprep.mubr.msk.f32.mxu1 %vm4878_vm0, %v4879_v11 }
0x19d2   :  { %4595 = vmatprep.subr.bf16.mxu1 %v4877_v9 }
0x19d5   :  { %4597 = vmatpush3.bf16.msra.mxu1 %v5487_v5 }
0x19d6   :  { %4604 = vmatprep.subr.bf16.mxu1 %v4877_v9 }
0x1a40   :  { %v2533_v56 = vpop.permute.xlu0 %2532 }
0x1aa3   :  { %v2519_v43 = vpop.f32.mrb[28].mxu1 }
0x1aa4   :  { %v2523_v45 = vadd.f32 %v2519_v43, %v2449_v22  ;;  %v4287_v46 = vpop.f32.mrb[29].mxu1 }
0x1aa6   :  { %4726 = vtanh.f32 %v2523_v45  ;;  %v3742_v48 = vmul.f32 -1.442695, %v2523_v45 }
0x1aa8   :  { %4728 = vpow2.f32 %v3742_v48 }
0x1ab0   :  { %v4727_v47 = vpop.eup %4726 }
0x1ab1   :  { %2537 = vrot.lane.b32.xlu1 %v4727_v47, %s4880_s6 }
0x1ab2   :  { %v4729_v49 = vpop.eup %4728 }
0x1ab3   :  { %v2527_v4 = vadd.f32 1.0, %v4729_v49 }
0x1ab5   :  { %4730 = vrcp.f32 %v2527_v4 }
0x1abf   :  { %v4731_v7 = vpop.eup %4730 }
0x1ac0   :  { %v2535_v57 = vmul.f32 %v4731_v7, %v2533_v56 }
0x1b23   :  { %v2538_v54 = vpop.permute.xlu1 %2537 }
0x1b24   :  { %v2540_v55 = vmul.f32 %v4731_v7, %v2538_v54 }
0x1b26   :  { %2542 = vrot.lane.b32.xlu1 %v2540_v55, %s4881_s1 }
0x1b98   :  { %v2543_v58 = vpop.permute.xlu1 %2542 }
0x1b99   :  { %v2545_v59 = vadd.f32 %v2543_v58, %v2535_v57 }
0x1b9b   :  { %4732 = vtanh.f32 %v2545_v59  ;;  %v2643_v14 = vrot.slane %v2545_v59, 6 }
0x1ba5   :  { %v4733_v12 = vpop.eup %4732 }
0x1ba6   :  { %2548 = vrot.lane.b32.xlu0 %v4733_v12, %s4880_s6 }
0x1c18   :  { %v2549_v16 = vpop.permute.xlu0 %2548 }
0x1c19   :  { %v5530_v63 = vmul.f32 %v4731_v7, %v2549_v16 }
0x1c1b   :  { %2557 = vrot.lane.b32.xlu1 %v5530_v63, %s4881_s1 }
0x1c8d   :  { %v2558_v0 = vpop.permute.xlu1 %2557 }
0x1c8e   :  { %4297 = vmatmul.mubr.msk.f32.vlgmr.msra.gmra.mrb[30].mxu0 %vm308_vm7, %v2558_v0 }
0x1c8f   :  { %4600 = vmatpush3.bf16.msra.mxu0 %v5475_v2  ;;  %4318 = vmatprep.mubr.msk.f32.mxu0 %vm4878_vm0, %v4879_v11 }
0x1c90   :  { %4601 = vmatprep.subr.bf16.mxu0 %v4877_v9 }
0x1c93   :  { %4603 = vmatpush3.bf16.msra.mxu0 %v5487_v5 }
0x1c94   :  { %4610 = vmatprep.subr.bf16.mxu0 %v4877_v9 }
0x1d61   :  { %v2627_v44 = vpop.f32.mrb[30].mxu0 }
0x1d62   :  { %v2632_v51 = vrot.slane %v2627_v44, 6  ;;  %v4298_v1 = vpop.f32.mrb[31].mxu0 }
0x1d64   :  { %v2634_v60 = vadd.f32 %v2632_v51, %v5501_v23 }
0x1d66   :  { %4734 = vtanh.f32 %v2634_v60  ;;  %v3744_v52 = vmul.f32 -1.442695, %v2634_v60 }
0x1d68   :  { %4736 = vpow2.f32 %v3744_v52 }
0x1d70   :  { %v4735_v3 = vpop.eup %4734 }
0x1d71   :  { %2647 = vrot.lane.b32.xlu0 %v4735_v3, %s4880_s6 }
0x1d72   :  { %v4737_v6 = vpop.eup %4736 }
0x1d73   :  { %v2638_v8 = vadd.f32 1.0, %v4737_v6 }
0x1d75   :  { %4738 = vrcp.f32 %v2638_v8 }
0x1d7f   :  { %v4739_v10 = vpop.eup %4738 }
0x1d80   :  { %v2645_v15 = vmul.f32 %v4739_v10, %v2643_v14 }
0x1de3   :  { %v2648_v13 = vpop.permute.xlu0 %2647 }
0x1de4   :  { %v2650_v53 = vmul.f32 %v4739_v10, %v2648_v13 }
0x1de6   :  { %2652 = vrot.lane.b32.xlu1 %v2650_v53, %s4881_s1 }
0x1e58   :  { %v2653_v17 = vpop.permute.xlu1 %2652 }
0x1e59   :  { %v2655_v18 = vadd.f32 %v2653_v17, %v2645_v15 }
0x1e5b   :  { %4740 = vtanh.f32 %v2655_v18  ;;  %v2753_v41 = vrot.slane %v2655_v18, 6 }
0x1e65   :  { %v4741_v61 = vpop.eup %4740 }
0x1e66   :  { %2658 = vrot.lane.b32.xlu0 %v4741_v61, %s4880_s6 }
0x1ed8   :  { %v2659_v62 = vpop.permute.xlu0 %2658 }
0x1ed9   :  { %v2661_v19 = vmul.f32 %v4739_v10, %v2659_v62 }
0x1edb   :  { %v2666_v20 = vrot.slane %v2661_v19, 2  ;;  %v3533_v48 = vsel %vm635_vm8, %v5530_v63, %v2661_v19 }
0x1edd   :  { %2667 = vrot.lane.b32.xlu1 %v2666_v20, %s4881_s1 }
0x1f4f   :  { %v2668_v21 = vpop.permute.xlu1 %2667 }
0x1f50   :  { %4308 = vmatmul.mubr.msk.f32.vlgmr.msra.gmra.mrb[30].mxu1 %vm308_vm7, %v2668_v21 }
0x1f51   :  { %4606 = vmatpush3.bf16.msra.mxu1 %v5475_v2  ;;  %4329 = vmatprep.mubr.msk.f32.mxu1 %vm4878_vm0, %v4879_v11 }
0x1f52   :  { %4607 = vmatprep.subr.bf16.mxu1 %v4877_v9 }
0x1f55   :  { %4609 = vmatpush3.bf16.msra.mxu1 %v5487_v5 }
0x1f56   :  { %4616 = vmatprep.subr.bf16.mxu1 %v4877_v9 }
0x2023   :  { %v2737_v22 = vpop.f32.mrb[30].mxu1 }
0x2024   :  { %v2742_v23 = vrot.slane %v2737_v22, 4  ;;  %v4309_v26 = vpop.f32.mrb[31].mxu1 }
0x2026   :  { %v2744_v27 = vadd.f32 %v2742_v23, %v5503_v24 }
0x2028   :  { %4742 = vtanh.f32 %v2744_v27  ;;  %v3746_v33 = vmul.f32 -1.442695, %v2744_v27 }
0x202a   :  { %4744 = vpow2.f32 %v3746_v33 }
0x2032   :  { %v4743_v28 = vpop.eup %4742 }
0x2033   :  { %2757 = vrot.lane.b32.xlu0 %v4743_v28, %s4880_s6 }
0x2034   :  { %v4745_v34 = vpop.eup %4744 }
0x2035   :  { %v2748_v35 = vadd.f32 1.0, %v4745_v34 }
0x2037   :  { %4746 = vrcp.f32 %v2748_v35 }
0x2041   :  { %v4747_v38 = vpop.eup %4746 }
0x2042   :  { %v2755_v42 = vmul.f32 %v4747_v38, %v2753_v41 }
0x20a5   :  { %v2758_v39 = vpop.permute.xlu0 %2757 }
0x20a6   :  { %v2760_v40 = vmul.f32 %v4747_v38, %v2758_v39 }
0x20a8   :  { %2762 = vrot.lane.b32.xlu1 %v2760_v40, %s4881_s1 }
0x211a   :  { %v2763_v43 = vpop.permute.xlu1 %2762 }
0x211b   :  { %v2765_v45 = vadd.f32 %v2763_v43, %v2755_v42 }
0x211d   :  { %4748 = vtanh.f32 %v2765_v45  ;;  %v2863_v51 = vrot.slane %v2765_v45, 6 }
0x2127   :  { %v4749_v24 = vpop.eup %4748 }
0x2128   :  { %2768 = vrot.lane.b32.xlu0 %v4749_v24, %s4880_s6 }
0x219a   :  { %v2769_v46 = vpop.permute.xlu0 %2768 }
0x219b   :  { %v2771_v47 = vmul.f32 %v4747_v38, %v2769_v46 }
0x219d   :  { %v2776_v49 = vrot.slane %v2771_v47, 4  ;;  %v3535_v4 = vsel %vm3534_vm11, %v3533_v48, %v2771_v47 }
0x219f   :  { %2777 = vrot.lane.b32.xlu1 %v2776_v49, %s4881_s1 }
0x2211   :  { %v2778_v7 = vpop.permute.xlu1 %2777 }
0x2212   :  { %4319 = vmatmul.mubr.msk.f32.vlgmr.msra.gmra.mrb[32].mxu0 %vm308_vm7, %v2778_v7 }
0x2213   :  { %4612 = vmatpush3.bf16.msra.mxu0 %v5475_v2  ;;  %4340 = vmatprep.mubr.msk.f32.mxu0 %vm4878_vm0, %v4879_v11 }
0x2214   :  { %4613 = vmatprep.subr.bf16.mxu0 %v4877_v9 }
0x2217   :  { %4615 = vmatpush3.bf16.msra.mxu0 %v5487_v5 }
0x2218   :  { %4622 = vmatprep.subr.bf16.mxu0 %v4877_v9 }
0x22e5   :  { %v2847_v54 = vpop.f32.mrb[32].mxu0 }
0x22e6   :  { %v2852_v55 = vrot.slane %v2847_v54, 2  ;;  %v4320_v56 = vpop.f32.mrb[33].mxu0 }
0x22e8   :  { %v2854_v57 = vadd.f32 %v2852_v55, %v5505_v25 }
0x22ea   :  { %4750 = vtanh.f32 %v2854_v57  ;;  %v3748_v59 = vmul.f32 -1.442695, %v2854_v57 }
0x22ec   :  { %4752 = vpow2.f32 %v3748_v59 }
0x22f4   :  { %v4751_v58 = vpop.eup %4750 }
0x22f5   :  { %2867 = vrot.lane.b32.xlu0 %v4751_v58, %s4880_s6 }
0x22f6   :  { %v4753_v12 = vpop.eup %4752 }
0x22f7   :  { %v2858_v16 = vadd.f32 1.0, %v4753_v12 }
0x22f9   :  { %4754 = vrcp.f32 %v2858_v16 }
0x2303   :  { %v4755_v63 = vpop.eup %4754 }
0x2304   :  { %v2865_v1 = vmul.f32 %v4755_v63, %v2863_v51 }
0x2367   :  { %v2868_v0 = vpop.permute.xlu0 %2867 }
0x2368   :  { %v2870_v44 = vmul.f32 %v4755_v63, %v2868_v0 }
0x236a   :  { %2872 = vrot.lane.b32.xlu1 %v2870_v44, %s4881_s1 }
0x23dc   :  { %v2873_v60 = vpop.permute.xlu1 %2872 }
0x23dd   :  { %v2875_v3 = vadd.f32 %v2873_v60, %v2865_v1 }
0x23df   :  { %4756 = vtanh.f32 %v2875_v3  ;;  %v2968_v22 = vrot.slane %v2875_v3, 6 }
0x23e9   :  { %v4757_v25 = vpop.eup %4756 }
0x23ea   :  { %2878 = vrot.lane.b32.xlu0 %v4757_v25, %s4880_s6 }
0x245c   :  { %v2879_v52 = vpop.permute.xlu0 %2878 }
0x245d   :  { %v2881_v6 = vmul.f32 %v4755_v63, %v2879_v52 }
0x245f   :  { %v2884_v8 = vrot.slane %v2881_v6, 6  ;;  %v5573_v10 = vsel %vm3536_vm12, %v3535_v4, %v2881_v6 }
0x2461   :  { %2885 = vrot.lane.b32.xlu1 %v2884_v8, %s4881_s1 }
0x24d3   :  { %v2886_v13 = vpop.permute.xlu1 %2885 }
0x24d4   :  { %4330 = vmatmul.mubr.msk.f32.vlgmr.msra.gmra.mrb[32].mxu1 %vm308_vm7, %v2886_v13 }
0x24d5   :  { %4618 = vmatpush3.bf16.msra.mxu1 %v5475_v2  ;;  %4351 = vmatprep.mubr.msk.f32.mxu1 %vm4878_vm0, %v4879_v11 }
0x24d6   :  { %4619 = vmatprep.subr.bf16.mxu1 %v4877_v9 }
0x24d9   :  { %4621 = vmatpush3.bf16.msra.mxu1 %v5487_v5 }
0x24da   :  { %4628 = vmatprep.subr.bf16.mxu1 %v4877_v9 }
0x25a7   :  { %v2955_v53 = vpop.f32.mrb[32].mxu1 }
0x25a8   :  { %v2959_v14 = vadd.f32 %v2955_v53, %v5507_v29  ;;  %v4331_v15 = vpop.f32.mrb[33].mxu1 }
0x25aa   :  { %4758 = vtanh.f32 %v2959_v14  ;;  %v3750_v18 = vmul.f32 -1.442695, %v2959_v14 }
0x25ac   :  { %4760 = vpow2.f32 %v3750_v18 }
0x25b4   :  { %v4759_v17 = vpop.eup %4758 }
0x25b5   :  { %2972 = vrot.lane.b32.xlu0 %v4759_v17, %s4880_s6 }
0x25b6   :  { %v4761_v61 = vpop.eup %4760 }
0x25b7   :  { %v2963_v62 = vadd.f32 1.0, %v4761_v61 }
0x25b9   :  { %4762 = vrcp.f32 %v2963_v62 }
0x25c3   :  { %v4763_v19 = vpop.eup %4762 }
0x25c4   :  { %v2970_v23 = vmul.f32 %v4763_v19, %v2968_v22 }
0x2627   :  { %v2973_v20 = vpop.permute.xlu0 %2972 }
0x2628   :  { %v2975_v21 = vmul.f32 %v4763_v19, %v2973_v20 }
0x262a   :  { %2977 = vrot.lane.b32.xlu1 %v2975_v21, %s4881_s1 }
0x269c   :  { %v2978_v26 = vpop.permute.xlu1 %2977 }
0x269d   :  { %v2980_v27 = vadd.f32 %v2978_v26, %v2970_v23 }
0x269f   :  { %4764 = vtanh.f32 %v2980_v27  ;;  %v3075_v48 = vrot.slane %v2980_v27, 6 }
0x26a9   :  { %v4765_v29 = vpop.eup %4764 }
0x26aa   :  { %2983 = vrot.lane.b32.xlu0 %v4765_v29, %s4880_s6 }
0x271c   :  { %v2984_v28 = vpop.permute.xlu0 %2983 }
0x271d   :  { %v5587_v33 = vmul.f32 %v4763_v19, %v2984_v28 }
0x271f   :  { %2989 = vrot.lane.b32.xlu1 %v5587_v33, %s4881_s1 }
0x2791   :  { %v2990_v34 = vpop.permute.xlu1 %2989 }
0x2792   :  { %4341 = vmatmul.mubr.msk.f32.vlgmr.msra.gmra.mrb[34].mxu0 %vm308_vm7, %v2990_v34 }
0x2793   :  { %4624 = vmatpush3.bf16.msra.mxu0 %v5475_v2  ;;  %4362 = vmatprep.mubr.msk.f32.mxu0 %vm4878_vm0, %v4879_v11 }
0x2794   :  { %4625 = vmatprep.subr.bf16.mxu0 %v4877_v9 }
0x2797   :  { %4627 = vmatpush3.bf16.msra.mxu0 %v5487_v5 }
0x2798   :  { %4634 = vmatprep.subr.bf16.mxu0 %v4877_v9 }
0x2865   :  { %v3059_v35 = vpop.f32.mrb[34].mxu0 }
0x2866   :  { %v3064_v38 = vrot.slane %v3059_v35, 6  ;;  %v4342_v39 = vpop.f32.mrb[35].mxu0 }
0x2868   :  { %v3066_v40 = vadd.f32 %v3064_v38, %v5509_v30 }
0x286a   :  { %4766 = vtanh.f32 %v3066_v40  ;;  %v3752_v42 = vmul.f32 -1.442695, %v3066_v40 }
0x286c   :  { %4768 = vpow2.f32 %v3752_v42 }
0x2874   :  { %v4767_v41 = vpop.eup %4766 }
0x2875   :  { %3079 = vrot.lane.b32.xlu0 %v4767_v41, %s4880_s6 }
0x2876   :  { %v4769_v43 = vpop.eup %4768 }
0x2877   :  { %v3070_v45 = vadd.f32 1.0, %v4769_v43 }
0x2879   :  { %4770 = vrcp.f32 %v3070_v45 }
0x2883   :  { %v4771_v24 = vpop.eup %4770 }
0x2884   :  { %v3077_v49 = vmul.f32 %v4771_v24, %v3075_v48 }
0x28e7   :  { %v3080_v46 = vpop.permute.xlu0 %3079 }
0x28e8   :  { %v3082_v47 = vmul.f32 %v4771_v24, %v3080_v46 }
0x28ea   :  { %3084 = vrot.lane.b32.xlu1 %v3082_v47, %s4881_s1 }
0x295c   :  { %v3085_v4 = vpop.permute.xlu1 %3084 }
0x295d   :  { %v3087_v7 = vadd.f32 %v3085_v4, %v3077_v49 }
0x295f   :  { %4772 = vtanh.f32 %v3087_v7  ;;  %v3183_v25 = vrot.slane %v3087_v7, 6 }
0x2969   :  { %v4773_v30 = vpop.eup %4772 }
0x296a   :  { %3090 = vrot.lane.b32.xlu0 %v4773_v30, %s4880_s6 }
0x29dc   :  { %v3091_v54 = vpop.permute.xlu0 %3090 }
0x29dd   :  { %v3093_v55 = vmul.f32 %v4771_v24, %v3091_v54 }
0x29df   :  { %v3096_v56 = vrot.slane %v3093_v55, 2  ;;  %v3538_v14 = vsel %vm635_vm8, %v5587_v33, %v3093_v55 }
0x29e1   :  { %3097 = vrot.lane.b32.xlu1 %v3096_v56, %s4881_s1 }
0x2a53   :  { %v3098_v57 = vpop.permute.xlu1 %3097 }
0x2a54   :  { %4352 = vmatmul.mubr.msk.f32.vlgmr.msra.gmra.mrb[34].mxu1 %vm308_vm7, %v3098_v57 }
0x2a55   :  { %4630 = vmatpush3.bf16.msra.mxu1 %v5475_v2  ;;  %4373 = vmatprep.mubr.msk.f32.mxu1 %vm4878_vm0, %v4879_v11 }
0x2a56   :  { %4631 = vmatprep.subr.bf16.mxu1 %v4877_v9 }
0x2a59   :  { %4633 = vmatpush3.bf16.msra.mxu1 %v5487_v5 }
0x2a5a   :  { %4640 = vmatprep.subr.bf16.mxu1 %v4877_v9 }
0x2b27   :  { %v3167_v58 = vpop.f32.mrb[34].mxu1 }
0x2b28   :  { %v3172_v59 = vrot.slane %v3167_v58, 4  ;;  %v4353_v12 = vpop.f32.mrb[35].mxu1 }
0x2b2a   :  { %v3174_v16 = vadd.f32 %v3172_v59, %v5511_v31 }
0x2b2c   :  { %4774 = vtanh.f32 %v3174_v16  ;;  %v3754_v0 = vmul.f32 -1.442695, %v3174_v16 }
0x2b2e   :  { %4776 = vpow2.f32 %v3754_v0 }
0x2b36   :  { %v4775_v63 = vpop.eup %4774 }
0x2b37   :  { %3187 = vrot.lane.b32.xlu0 %v4775_v63, %s4880_s6 }
0x2b38   :  { %v4777_v44 = vpop.eup %4776 }
0x2b39   :  { %v3178_v51 = vadd.f32 1.0, %v4777_v44  ;;  %v3542_v44 = vld [vmem:[%s5751_s21] sm:$0xff] }
0x2b3b   :  { %4778 = vrcp.f32 %v3178_v51  ;;  %v3543_v51 = vld [vmem:[%s5751_s21 + $0x8] sm:$0xff] }
0x2b45   :  { %v4779_v1 = vpop.eup %4778 }
0x2b46   :  { %v3185_v52 = vmul.f32 %v4779_v1, %v3183_v25 }
0x2ba9   :  { %v3188_v60 = vpop.permute.xlu0 %3187 }
0x2baa   :  { %v3190_v3 = vmul.f32 %v4779_v1, %v3188_v60 }
0x2bac   :  { %3192 = vrot.lane.b32.xlu1 %v3190_v3, %s4881_s1 }
0x2c1e   :  { %v3193_v6 = vpop.permute.xlu1 %3192 }
0x2c1f   :  { %v3195_v8 = vadd.f32 %v3193_v6, %v3185_v52  ;;  %v3544_v52 = vld [vmem:[%s5751_s21 + $0x10] sm:$0xff]  ;;  %v3545_v6 = vld [vmem:[%s5751_s21 + $0x18] sm:$0xff] }
0x2c21   :  { %4780 = vtanh.f32 %v3195_v8 }
0x2c2b   :  { %v4781_v31 = vpop.eup %4780 }
0x2c2c   :  { %3198 = vrot.lane.b32.xlu0 %v4781_v31, %s4880_s6 }
0x2c9e   :  { %v3199_v13 = vpop.permute.xlu0 %3198 }
0x2c9f   :  { %v3201_v53 = vmul.f32 %v4779_v1, %v3199_v13  ;;  %v4641_v1 = vpack.c.bf16 %v3543_v51, %v3542_v44 }
0x2ca1   :  { %v3204_v15 = vrot.slane %v3201_v53, 4  ;;  %v3539_v17 = vsel %vm3534_vm11, %v3538_v14, %v3201_v53 }
0x2ca3   :  { %3205 = vrot.lane.b32.xlu1 %v3204_v15, %s4881_s1 }
0x2d15   :  { %v3206_v18 = vpop.permute.xlu1 %3205 }
0x2d16   :  { %4363 = vmatmul.mubr.msk.f32.vlgmr.msra.gmra.mrb[36].mxu0 %vm308_vm7, %v3206_v18 }
0x2d17   :  { %4636 = vmatpush3.bf16.msra.mxu0 %v5475_v2  ;;  %4384 = vmatprep.mubr.msk.f32.mxu0 %vm4878_vm0, %v4879_v11 }
0x2d18   :  { %4637 = vmatprep.subr.bf16.mxu0 %v4877_v9 }
0x2d1b   :  { %4639 = vmatpush3.bf16.msra.mxu0 %v5487_v5  ;;  %v3291_v5 = vrot.slane %v3195_v8, 6  ;;  %v4644_v8 = vpack.c.bf16 %v3545_v6, %v3544_v52 }
0x2de9   :  { %v3275_v61 = vpop.f32.mrb[36].mxu0 }
0x2dea   :  { %v3280_v62 = vrot.slane %v3275_v61, 2  ;;  %v4364_v19 = vpop.f32.mrb[37].mxu0 }
0x2dec   :  { %v3282_v20 = vadd.f32 %v3280_v62, %v5513_v32 }
0x2dee   :  { %4782 = vtanh.f32 %v3282_v20  ;;  %v3756_v22 = vmul.f32 -1.442695, %v3282_v20 }
0x2df0   :  { %4784 = vpow2.f32 %v3756_v22 }
0x2df8   :  { %v4783_v21 = vpop.eup %4782 }
0x2df9   :  { %3295 = vrot.lane.b32.xlu0 %v4783_v21, %s4880_s6 }
0x2dfa   :  { %v4785_v23 = vpop.eup %4784 }
0x2dfb   :  { %v3286_v2 = vadd.f32 1.0, %v4785_v23 }
0x2dfd   :  { %4786 = vrcp.f32 %v3286_v2 }
0x2e07   :  { %v4787_v26 = vpop.eup %4786 }
0x2e08   :  { %v3293_v28 = vmul.f32 %v4787_v26, %v3291_v5 }
0x2e6b   :  { %v3296_v27 = vpop.permute.xlu0 %3295 }
0x2e6c   :  { %v3298_v29 = vmul.f32 %v4787_v26, %v3296_v27 }
0x2e6e   :  { %3300 = vrot.lane.b32.xlu1 %v3298_v29, %s4881_s1 }
0x2ee0   :  { %v3301_v33 = vpop.permute.xlu1 %3300 }
0x2ee1   :  { %v3303_v34 = vadd.f32 %v3301_v33, %v3293_v28 }
0x2ee3   :  { %4788 = vtanh.f32 %v3303_v34  ;;  %v3396_v30 = vrot.slane %v3303_v34, 6 }
0x2eed   :  { %v4789_v32 = vpop.eup %4788 }
0x2eee   :  { %3306 = vrot.lane.b32.xlu0 %v4789_v32, %s4880_s6 }
0x2f60   :  { %v3307_v35 = vpop.permute.xlu0 %3306 }
0x2f61   :  { %v3309_v38 = vmul.f32 %v4787_v26, %v3307_v35 }
0x2f63   :  { %v3312_v39 = vrot.slane %v3309_v38, 6  ;;  %v5629_v40 = vsel %vm3536_vm12, %v3539_v17, %v3309_v38 }
0x2f65   :  { %3313 = vrot.lane.b32.xlu1 %v3312_v39, %s4881_s1 }
0x2fd7   :  { %v3314_v41 = vpop.permute.xlu1 %3313 }
0x2fd8   :  { %4374 = vmatmul.mubr.msk.f32.vlgmr.msra.gmra.mrb[36].mxu1 %vm308_vm7, %v3314_v41 }
0x2fd9   :  { %4395 = vmatprep.mubr.msk.f32.mxu1 %vm4878_vm0, %v4879_v11  ;;  %4642 = vmatpush3.bf16.msra.mxu1 %v4641_v1 }
0x2fda   :  { %4643 = vmatprep.subr.bf16.mxu1 %v4877_v9 }
0x2fdd   :  { %4645 = vmatpush3.bf16.msra.mxu1 %v4644_v8 }
0x30ab   :  { %v3383_v42 = vpop.f32.mrb[36].mxu1 }
0x30ac   :  { %v3387_v43 = vadd.f32 %v3383_v42, %v5517_v37  ;;  %v4375_v45 = vpop.f32.mrb[37].mxu1 }
0x30ae   :  { %4790 = vtanh.f32 %v3387_v43  ;;  %v3758_v46 = vmul.f32 -1.442695, %v3387_v43 }
0x30b0   :  { %4792 = vpow2.f32 %v3758_v46 }
0x30b8   :  { %v4791_v24 = vpop.eup %4790 }
0x30b9   :  { %3400 = vrot.lane.b32.xlu0 %v4791_v24, %s4880_s6 }
0x30ba   :  { %v4793_v47 = vpop.eup %4792 }
0x30bb   :  { %v3391_v48 = vadd.f32 1.0, %v4793_v47 }
0x30bd   :  { %4794 = vrcp.f32 %v3391_v48 }
0x30c7   :  { %v4795_v49 = vpop.eup %4794 }
0x30c8   :  { %v3398_v54 = vmul.f32 %v4795_v49, %v3396_v30 }
0x312b   :  { %v3401_v4 = vpop.permute.xlu0 %3400 }
0x312c   :  { %v3403_v7 = vmul.f32 %v4795_v49, %v3401_v4 }
0x312e   :  { %3405 = vrot.lane.b32.xlu1 %v3403_v7, %s4881_s1 }
0x31a0   :  { %v3406_v55 = vpop.permute.xlu1 %3405 }
0x31a1   :  { %v3408_v56 = vadd.f32 %v3406_v55, %v3398_v54 }
0x31a3   :  { %4796 = vtanh.f32 %v3408_v56  ;;  %v3503_v53 = vrot.slane %v3408_v56, 6 }
0x31ad   :  { %v4797_v37 = vpop.eup %4796 }
0x31ae   :  { %3411 = vrot.lane.b32.xlu0 %v4797_v37, %s4880_s6 }
0x3220   :  { %v3412_v57 = vpop.permute.xlu0 %3411 }
0x3221   :  { %v3414_v58 = vmul.f32 %v4795_v49, %v3412_v57 }
0x3223   :  { %3417 = vrot.lane.b32.xlu1 %v3414_v58, %s4881_s1 }
0x3295   :  { %v3418_v59 = vpop.permute.xlu1 %3417 }
0x3296   :  { %4385 = vmatmul.mubr.msk.f32.vlgmr.msra.gmra.mrb[38].mxu0 %vm308_vm7, %v3418_v59 }
0x3369   :  { %v3487_v12 = vpop.f32.mrb[38].mxu0 }
0x336a   :  { %v3492_v16 = vrot.slane %v3487_v12, 6  ;;  %v4386_v63 = vpop.f32.mrb[39].mxu0 }
0x336c   :  { %v3494_v0 = vadd.f32 %v3492_v16, %v5515_v36 }
0x336e   :  { %4798 = vtanh.f32 %v3494_v0  ;;  %v3760_v3 = vmul.f32 -1.442695, %v3494_v0 }
0x3370   :  { %4800 = vpow2.f32 %v3760_v3 }
0x3378   :  { %v4799_v60 = vpop.eup %4798 }
0x3379   :  { %3507 = vrot.lane.b32.xlu0 %v4799_v60, %s4880_s6 }
0x337a   :  { %v4801_v25 = vpop.eup %4800 }
0x337b   :  { %v3498_v36 = vadd.f32 1.0, %v4801_v25 }
0x337d   :  { %4802 = vrcp.f32 %v3498_v36 }
0x3387   :  { %v4803_v31 = vpop.eup %4802 }
0x3388   :  { %v3505_v14 = vmul.f32 %v4803_v31, %v3503_v53 }
0x33eb   :  { %v3508_v9 = vpop.permute.xlu0 %3507 }
0x33ec   :  { %v3510_v13 = vmul.f32 %v4803_v31, %v3508_v9 }
0x33ee   :  { %3512 = vrot.lane.b32.xlu1 %v3510_v13, %s4881_s1 }
0x33f2   :  { %3556 = vrot.lane.b32.xlu1 %v5573_v10, %s4881_s1  ;;  %v2161_v10 = vsel %vm2160_vm13, %v5434_v50, 0.0 }
0x3460   :  { %v3513_v15 = vpop.permute.xlu1 %3512 }
0x3461   :  { %v3515_v17 = vadd.f32 %v3513_v15, %v3505_v14 }
0x3463   :  { %4804 = vtanh.f32 %v3515_v17 }
0x3464   :  { %v3557_v18 = vpop.permute.xlu1 %3556 }
0x3465   :  { %4396 = vmatmul.mubr.msk.f32.vlgmr.msra.gmra.mrb[38].mxu1 %vm308_vm7, %v3557_v18 }
0x3466   :  { %4398 = vmatprep.mubr.msk.f32.mxu1 %vm4878_vm0, %v4879_v11 }
0x346d   :  { %v4805_v61 = vpop.eup %4804 }
0x346e   :  { %3518 = vrot.lane.b32.xlu0 %v4805_v61, %s4880_s6 }
0x3472   :  { %3558 = vrot.lane.b32.xlu0 %v5629_v40, %s4881_s1 }
0x3491   :  { %2162 = vadd.xlane.f32.xlu0 %v2161_v10 }
0x34e0   :  { %v3519_v62 = vpop.permute.xlu0 %3518 }
0x34e1   :  { %v3521_v19 = vmul.f32 %v4803_v31, %v3519_v62 }
0x34e3   :  { %v3541_v20 = vsel %vm635_vm8, %v3414_v58, %v3521_v19 }
0x34e4   :  { %3560 = vrot.lane.b32.xlu1 %v3541_v20, %s4881_s1  ;;  %v3559_v21 = vpop.permute.xlu0 %3558 }
0x34e5   :  { %4399 = vmatmul.mubr.msk.f32.gmra.mrb[40].mxu1 %vm308_vm7, %v3559_v21 }
0x34e6   :  { %4401 = vmatprep.mubr.msk.f32.mxu1 %vm4878_vm0, %v4879_v11  ;;  %v5677_v11 = vld [vmem:[%s5752_s22] ss:$0 sm:$0xff]  ;;  %s3670_s22 = sshll.u32 %s4883_s27, 4  ;;  %s3671_s22 = int_to_ptr.vmem [resolvable:$true] %s3670_s22 }
0x34e7   :  { %s4806_s12 = scalar_lea.vmem %s3671_s22, 32  ;;  %p4811_p1 = scmp.lt.s32.totalorder %s3671_s22, %s3671_s22 }
0x34e8   :  { %3529 = vrot.lane.b32.xlu1 %v3515_v17, %s4882_s19  ;;  %p4807_p0 = scmp.ne.s32.totalorder %s3671_s22, %s4806_s12  ;;  %p4812_p2 = scmp.lt.s32.totalorder %s4806_s12, %s4806_s12 }
0x34ea   :  { %p4813_p3 = por %p4812_p2, %p4811_p1 }
0x34ec   :  { %3523 = vrot.lane.b32.xlu1 %v3521_v19, %s4881_s1  ;;  %p4814_p4 = pnand %p4813_p3, %p4807_p0 }
0x351e   :  { %v2163_v22 = vpop.xlane.xlu0 %2162 }
0x351f   :  { %v2164_v23 = vmul.f32 -0.5, %v2163_v22 }
0x3521   :  { %v2165_v50 = vsel %vm635_vm8, %v2164_v23, 0.0 }
0x3522   :  { %v2166_v2 = vrot.slane %v2165_v50, 4 }
0x3524   :  { %v2167_v26 = vadd.f32 %v2166_v2, %v2165_v50 }
0x3526   :  { %v2168_v27 = vrot.slane %v2167_v26, 2 }
0x3528   :  { %v2169_v29 = vadd.f32 %v2168_v27, %v2167_v26 }
0x352a   :  { %v2170_v5 = vrot.slane %v2169_v29, 1 }
0x352c   :  { %v2171_v28 = vadd.f32 %v2170_v5, %v2169_v29 }
0x352e   :  { %v2173_v33 = vmul.f32 0.5, %v2171_v28 }
0x3530   :  { %2175 = vst.msk [vmem:[#allocation6] sm:$0x1] %vm2174_vm14, %v2173_v33 }
0x3538   :  { %v3634_v34 = vpop.f32.mrb[38].mxu1 }
0x3539   :  { %v3635_v32 = vadd.f32 %v5677_v11, %v3634_v34  ;;  %v4397_v35 = vpop.f32.mrb[39].mxu1 }
0x353b   :  { %3648 = vst.msk [vmem:[%s5753_s23] sm:$0xff] %vm102_vm1, %v3635_v32 }
0x3556   :  { %v3561_v38 = vpop.permute.xlu1 %3560 }
0x3557   :  { %4402 = vmatmul.mubr.msk.f32.gmra.mrb[42].mxu1 %vm308_vm7, %v3561_v38 }
0x355a   :  { %v3530_v39 = vpop.permute.xlu1 %3529 }
0x355b   :  { %3532 = vst.msk [vmem:[#allocation4 - $0x2] sm:$0xc] %vm3526_vm15, %v3530_v39 }
0x355e   :  { %v3524_v40 = vpop.permute.xlu1 %3523 }
0x355f   :  { %3527 = vst.msk [vmem:[#allocation2 - $0x2] sm:$0xc] %vm3526_vm15, %v3524_v40 }
0x3560   :  { %4817 = shalt.err (!%p4814_p4)
}
0x3561   :  { %s4818_s14 = scalar_lea.hbm %s5755_s25, 32 }
0x3562   :  { %p4819_p5 = scmp.ne.s32.totalorder %s5755_s25, %s4818_s14  ;;  %p4822_p6 = scmp.lt.u32.totalorder %s4818_s14, %s5755_s25 }
0x3564   :  { %p4824_p7 = pnand %p4822_p6, %p4819_p5 }
0x3566   :  { %4827 = shalt.err (!%p4824_p7)
}
0x3567   :  { %3673 = dma.vmem_to_hbm [thread:$0]  %s3671_s22, 32, %s5755_s25, [#allocation5]  }
0x3568   :  { %s4828_s4 = scalar_lea.vmem %s3661_s7, 32  ;;  %p4833_p9 = scmp.lt.s32.totalorder %s3661_s7, %s3661_s7 }
0x3569   :  { %p4829_p8 = scmp.ne.s32.totalorder %s3661_s7, %s4828_s4  ;;  %p4834_p10 = scmp.lt.s32.totalorder %s4828_s4, %s4828_s4 }
0x356b   :  { %p4835_p11 = por %p4834_p10, %p4833_p9 }
0x356d   :  { %p4836_p12 = pnand %p4835_p11, %p4829_p8 }
0x356f   :  { %4839 = shalt.err (!%p4836_p12)
}
0x3570   :  { %s4840_s0 = scalar_lea.hbm %s5754_s24, 32 }
0x3571   :  { %p4841_p13 = scmp.ne.s32.totalorder %s5754_s24, %s4840_s0  ;;  %p4844_p0 = scmp.lt.u32.totalorder %s4840_s0, %s5754_s24 }
0x3573   :  { %p4846_p1 = pnand %p4844_p0, %p4841_p13 }
0x3575   :  { %4849 = shalt.err (!%p4846_p1)
}
0x3576   :  { %3663 = dma.vmem_to_hbm [thread:$0]  %s3661_s7, 32, %s5754_s24, [#allocation3]  }
0x3577   :  { %s4885_s21 = smov [#allocation6]  }
0x3578   :  { %s3680_s6 = sshll.u32 %s4885_s21, 4  ;;  %s3681_s6 = int_to_ptr.vmem [resolvable:$true] %s3680_s6 }
0x3579   :  { %s4850_s1 = scalar_lea.vmem %s3681_s6, 16  ;;  %s4854_s10 = scalar_lea.vmem %s3681_s6, 32 }
0x357a   :  { %p4851_p2 = scmp.ne.s32.totalorder %s3681_s6, %s4850_s1  ;;  %p4855_p3 = scmp.lt.s32.totalorder %s3681_s6, %s3681_s6 }
0x357b   :  { %p4856_p4 = scmp.lt.s32.totalorder %s4854_s10, %s4850_s1 }
0x357d   :  { %p4857_p5 = por %p4856_p4, %p4855_p3 }
0x357f   :  { %p4858_p6 = pnand %p4857_p5, %p4851_p2 }
0x3581   :  { %4861 = shalt.err (!%p4858_p6)
}
0x3582   :  { %s4862_s15 = scalar_lea.hbm %s5756_s26, 16 }
0x3583   :  { %p4863_p7 = scmp.ne.s32.totalorder %s5756_s26, %s4862_s15  ;;  %p4866_p8 = scmp.lt.u32.totalorder %s4862_s15, %s5756_s26 }
0x3585   :  { %p4868_p9 = pnand %p4866_p8, %p4863_p7 }
0x3587   :  { %4871 = shalt.err (!%p4868_p9)
}
0x3588   :  { %3683 = dma.vmem_to_hbm [thread:$0]  %s3681_s6, 16, %s5756_s26, [#allocation5]   ;;  %vm3650_vm0 = vcmask 519168  }
0x35b8   :  { %v3639_v41 = vpop.f32.mrb[40].mxu1 }
0x35b9   :  { %v3640_v42 = vadd.f32 %v5677_v11, %v3639_v41  ;;  %v4400_v43 = vpop.f32.mrb[41].mxu1 }
0x35bb   :  { %3649 = vst.msk [vmem:[%s5753_s23 + $0x8] sm:$0xff] %vm102_vm1, %v3640_v42 }
0x362a   :  { %v3644_v45 = vpop.f32.mrb[42].mxu1 }
0x362b   :  { %v3645_v24 = vadd.f32 %v5677_v11, %v3644_v45  ;;  %v4403_v46 = vpop.f32.mrb[43].mxu1 }
0x362d   :  { %3651 = vst.msk [vmem:[%s5753_s23 + $0x10] sm:$0xf] %vm3650_vm0, %v3645_v24 }
0x362e   :  { %4872 = dma.done.wait [#allocation3], 32  }
0x362f   :  { %4873 = vsyncadd [#allocation3], 4294967264 }
0x3630   :  { %4874 = dma.done.wait [#allocation5], 48  }
0x3631   :  { %4875 = vsyncadd [#allocation5], 4294967248 }
0x3632   :  { %3695 = vsyncpa [#allocation3], 1 }
0x3633   :  { %3696 = vsyncpa [#allocation5], 1 }

</bundles_post_ra>
